<compile_context>
chip_gen: v7x
topology: tpu7x:2x2x1
jax: 0.10.0
libtpu: 0.0.40
codegen_flags: <defaults>
</compile_context>

<pallas_src>
import jax
import jax.numpy as jnp
from jax.experimental import pallas as pl
from jax.experimental.pallas import tpu as pltpu


LAYER_DIMS = [(512, 512), (512, 256), (256, 256), (256, 128), (128, 2)]
PAD_OUT = 128      # lane-dense padded width of the final (128 -> 2) layer
MIN_TILE = 128     # amortizes MXU fill/drain even for tiny batches
MAX_TILE = 1024    # a few MiB of VMEM; well inside the 32 MiB scoped limit


def mlp_kernel(x_ref,
               w0_ref, b0_ref,
               w1_ref, b1_ref,
               w2_ref, b2_ref,
               w3_ref, b3_ref,
               w4_ref, b4_ref,
               o_ref):
    # f32 x tile arrives via DMA; cast to bf16 on the VPU (free under MXU
    # slack), run all matmuls on the MXU with f32 accumulation, keep bf16
    # activations between layers.
    x = x_ref[...].astype(jnp.bfloat16)

    h = jnp.dot(x, w0_ref[...], preferred_element_type=jnp.float32)
    h = jnp.maximum(h + b0_ref[...], 0.0).astype(jnp.bfloat16)

    h = jnp.dot(h, w1_ref[...], preferred_element_type=jnp.float32)
    h = jnp.maximum(h + b1_ref[...], 0.0).astype(jnp.bfloat16)

    h = jnp.dot(h, w2_ref[...], preferred_element_type=jnp.float32)
    h = jnp.maximum(h + b2_ref[...], 0.0).astype(jnp.bfloat16)

    h = jnp.dot(h, w3_ref[...], preferred_element_type=jnp.float32)
    h = jnp.maximum(h + b3_ref[...], 0.0).astype(jnp.bfloat16)

    h = jnp.dot(h, w4_ref[...], preferred_element_type=jnp.float32)
    o_ref[...] = (h + b4_ref[...]).astype(o_ref.dtype)


def _round_up(x, m):
    return ((x + m - 1) // m) * m


def _choose_batch_tile(B):
    """One big tile when it fits; otherwise the largest <=MAX_TILE tile that
    divides the 8-row-rounded batch (so no padded copy of x is needed)."""
    b8 = _round_up(B, 8)
    if b8 <= MIN_TILE:
        return MIN_TILE
    if b8 <= MAX_TILE:
        return b8
    for t in range(MAX_TILE, MIN_TILE - 1, -8):
        if b8 % t == 0:
            return t
    return MAX_TILE  # fallback: pad the last tile


def prepare_params(params):
    """Cast weights to bf16 once; pad the final layer to lane-dense [128,128].

    params: list of (W[in,out] f32, b[1,out] f32) matching mnistNet.
    Returns ([(W_bf16, b_f32), ...], true_out_dim).
    """
    (w0, b0), (w1, b1), (w2, b2), (w3, b3), (w4, b4) = params
    out_dim = w4.shape[1]
    w4p = jnp.zeros((w4.shape[0], PAD_OUT), w4.dtype).at[:, :out_dim].set(w4)
    b4p = jnp.zeros((1, PAD_OUT), b4.dtype).at[:, :out_dim].set(b4)
    ws = [w0, w1, w2, w3, w4p]
    bs = [b0, b1, b2, b3, b4p]
    prepped = [(w.astype(jnp.bfloat16), b.astype(jnp.float32))
               for w, b in zip(ws, bs)]
    return prepped, out_dim


def mnist_net_forward(x, params, *, batch_tile=None):
    """x: [B, 512] float32. params: list of (W[in,out], b[1,out]) in f32."""
    B, D_in = x.shape
    assert D_in == 512

    prepped, out_dim = prepare_params(params)

    if batch_tile is None:
        batch_tile = _choose_batch_tile(B)
    batch_tile = max(8, _round_up(batch_tile, 8))

    B_pad = _round_up(B, batch_tile)
    x_in = x
    if B_pad != B:
        # Only materialized when the tile does not divide B (rare by
        # construction, or tiny batches padded to a 128-row tile).
        x_in = jnp.pad(x, ((0, B_pad - B), (0, 0)))

    grid = (B_pad // batch_tile,)

    padded_dims = [(512, 512), (512, 256), (256, 256), (256, 128), (128, PAD_OUT)]
    flops = 2 * B_pad * sum(di * do for di, do in padded_dims)
    bytes_accessed = (x_in.size * 4
                      + sum(w.size * 2 + b.size * 4 for (w, b) in prepped)
                      + B_pad * PAD_OUT * 4)

    def resident_spec(shape):
        # Whole-array block with a constant index: stays VMEM-resident across
        # grid steps (no re-DMA).
        nd = len(shape)
        return pl.BlockSpec(shape, lambda i, _nd=nd: (0,) * _nd)

    in_specs = [pl.BlockSpec((batch_tile, 512), lambda i: (i, 0))]  # x tile (f32)
    for (w, b) in prepped:
        in_specs.append(resident_spec(w.shape))
        in_specs.append(resident_spec(b.shape))
    out_spec = pl.BlockSpec((batch_tile, PAD_OUT), lambda i: (i, 0))

    call = pl.pallas_call(
        mlp_kernel,
        out_shape=jax.ShapeDtypeStruct((B_pad, PAD_OUT), jnp.float32),
        grid_spec=pltpu.PrefetchScalarGridSpec(
            num_scalar_prefetch=0,
            grid=grid,
            in_specs=in_specs,
            out_specs=out_spec,
        ),
        compiler_params=pltpu.CompilerParams(
            dimension_semantics=("parallel",),
            vmem_limit_bytes=32 * 1024 * 1024,
        ),
        cost_estimate=pl.CostEstimate(
            flops=flops, transcendentals=0, bytes_accessed=bytes_accessed),
    )

    flat_args = [x_in]
    for (w, b) in prepped:
        flat_args.extend([w, b])

    out = call(*flat_args)
    return out[:B, :out_dim]


def init_params(key):
    """Deterministic init. Shapes match mnistNet (weights stored as [in, out])."""
    params = []
    for (d_in, d_out) in LAYER_DIMS:
        key, kw, kb = jax.random.split(key, 3)
        bound = 1.0 / jnp.sqrt(d_in)  # matches PyTorch Linear default init range
        w = jax.random.uniform(kw, (d_in, d_out), jnp.float32, -bound, bound)
        b = jax.random.uniform(kb, (1, d_out), jnp.float32, -bound, bound)
        params.append((w, b))
    return params


def reference_forward(x, params):
    """Pure-JAX reference mirroring the kernel's bf16/f32 mixed precision."""
    prepped, out_dim = prepare_params(params)
    h = x.astype(jnp.bfloat16)
    for i, (w, b) in enumerate(prepped):
        h = jnp.dot(h, w, preferred_element_type=jnp.float32) + b
        if i < len(prepped) - 1:
            h = jnp.maximum(h, 0.0).astype(jnp.bfloat16)
    return h[:, :out_dim].astype(jnp.float32)


if __name__ == "__main__":
    key = jax.random.PRNGKey(0)
    key, kx1, kx2 = jax.random.split(key, 3)
    params = init_params(key)

    # Tiny batch: padded up to one 128-row tile (single grid step).
    B1 = 8
    x1 = jax.random.normal(kx1, (B1, 512), dtype=jnp.float32)
    out1 = jax.block_until_ready(mnist_net_forward(x1, params))
    ref1 = reference_forward(x1, params)
    assert out1.shape == (B1, 2)
    assert jnp.allclose(out1, ref1, atol=1e-2, rtol=1e-2)

    # Multi-tile batch: two 128-row grid steps, no padding, "parallel" grid axis.
    B2 = 256
    x2 = jax.random.normal(kx2, (B2, 512), dtype=jnp.float32)
    out2 = jax.block_until_ready(mnist_net_forward(x2, params, batch_tile=128))
    ref2 = reference_forward(x2, params)
    assert out2.shape == (B2, 2)
    assert jnp.allclose(out2, ref2, atol=1e-2, rtol=1e-2)

    print("KERNEL_OK")
</pallas_src>

<mosaic_0001>
module attributes {stable_mosaic.version = 11 : i64} {
  func.func @mlp_kernel(%arg0: i32, %arg1: memref<128x512xf32, #tpu.memory_space<vmem>>, %arg2: memref<512x512xbf16, #tpu.memory_space<vmem>>, %arg3: memref<1x512xf32, #tpu.memory_space<vmem>>, %arg4: memref<512x256xbf16, #tpu.memory_space<vmem>>, %arg5: memref<1x256xf32, #tpu.memory_space<vmem>>, %arg6: memref<256x256xbf16, #tpu.memory_space<vmem>>, %arg7: memref<1x256xf32, #tpu.memory_space<vmem>>, %arg8: memref<256x128xbf16, #tpu.memory_space<vmem>>, %arg9: memref<1x128xf32, #tpu.memory_space<vmem>>, %arg10: memref<128x128xbf16, #tpu.memory_space<vmem>>, %arg11: memref<1x128xf32, #tpu.memory_space<vmem>>, %arg12: memref<128x128xf32, #tpu.memory_space<vmem>>) attributes {dimension_semantics = [#tpu.dimension_semantics<parallel>], iteration_bounds = array<i64: 1>, scalar_prefetch = 0 : i64, scratch_operands = 0 : i64, tpu.core_type = #tpu.core_type<tc>, window_params = [{transform_indices = @transform_0, window_bounds = array<i64: 128, 512>}, {pipeline_mode = #tpu.pipeline_mode<synchronous>, transform_indices = @transform_1, window_bounds = array<i64: 512, 512>}, {pipeline_mode = #tpu.pipeline_mode<synchronous>, transform_indices = @transform_2, window_bounds = array<i64: 1, 512>}, {pipeline_mode = #tpu.pipeline_mode<synchronous>, transform_indices = @transform_3, window_bounds = array<i64: 512, 256>}, {pipeline_mode = #tpu.pipeline_mode<synchronous>, transform_indices = @transform_4, window_bounds = array<i64: 1, 256>}, {pipeline_mode = #tpu.pipeline_mode<synchronous>, transform_indices = @transform_5, window_bounds = array<i64: 256, 256>}, {pipeline_mode = #tpu.pipeline_mode<synchronous>, transform_indices = @transform_6, window_bounds = array<i64: 1, 256>}, {pipeline_mode = #tpu.pipeline_mode<synchronous>, transform_indices = @transform_7, window_bounds = array<i64: 256, 128>}, {pipeline_mode = #tpu.pipeline_mode<synchronous>, transform_indices = @transform_8, window_bounds = array<i64: 1, 128>}, {pipeline_mode = #tpu.pipeline_mode<synchronous>, transform_indices = @transform_9, window_bounds = array<i64: 128, 128>}, {pipeline_mode = #tpu.pipeline_mode<synchronous>, transform_indices = @transform_10, window_bounds = array<i64: 1, 128>}, {transform_indices = @transform_11, window_bounds = array<i64: 128, 128>}]} {
    %c0 = arith.constant 0 : index
    %c0_0 = arith.constant 0 : index
    %0 = vector.load %arg1[%c0, %c0_0] : memref<128x512xf32, #tpu.memory_space<vmem>>, vector<128x512xf32>
    %1 = arith.truncf %0 : vector<128x512xf32> to vector<128x512xbf16>
    %c0_1 = arith.constant 0 : index
    %c0_2 = arith.constant 0 : index
    %2 = vector.load %arg2[%c0_1, %c0_2] : memref<512x512xbf16, #tpu.memory_space<vmem>>, vector<512x512xbf16>
    %cst = arith.constant dense<0.000000e+00> : vector<128x512xf32>
    %3 = tpu.matmul %1, %2, %cst {dimension_numbers = #tpu.dot_dimension_numbers<[1], [0], [0], [1], [0, 0, 1, 1], [], []>} : vector<128x512xbf16>, vector<512x512xbf16>, vector<128x512xf32> -> vector<128x512xf32>
    %c0_3 = arith.constant 0 : index
    %c0_4 = arith.constant 0 : index
    %4 = vector.load %arg3[%c0_3, %c0_4] : memref<1x512xf32, #tpu.memory_space<vmem>>, vector<1x512xf32>
    %5 = vector.broadcast %4 : vector<1x512xf32> to vector<128x512xf32>
    %6 = arith.addf %3, %5 : vector<128x512xf32>
    %cst_5 = arith.constant 0.000000e+00 : f32
    %7 = vector.broadcast %cst_5 : f32 to vector<128x512xf32>
    %8 = arith.maximumf %6, %7 : vector<128x512xf32>
    %9 = arith.truncf %8 : vector<128x512xf32> to vector<128x512xbf16>
    %c0_6 = arith.constant 0 : index
    %c0_7 = arith.constant 0 : index
    %10 = vector.load %arg4[%c0_6, %c0_7] : memref<512x256xbf16, #tpu.memory_space<vmem>>, vector<512x256xbf16>
    %cst_8 = arith.constant dense<0.000000e+00> : vector<128x256xf32>
    %11 = tpu.matmul %9, %10, %cst_8 {dimension_numbers = #tpu.dot_dimension_numbers<[1], [0], [0], [1], [0, 0, 1, 1], [], []>} : vector<128x512xbf16>, vector<512x256xbf16>, vector<128x256xf32> -> vector<128x256xf32>
    %c0_9 = arith.constant 0 : index
    %c0_10 = arith.constant 0 : index
    %12 = vector.load %arg5[%c0_9, %c0_10] : memref<1x256xf32, #tpu.memory_space<vmem>>, vector<1x256xf32>
    %13 = vector.broadcast %12 : vector<1x256xf32> to vector<128x256xf32>
    %14 = arith.addf %11, %13 : vector<128x256xf32>
    %cst_11 = arith.constant 0.000000e+00 : f32
    %15 = vector.broadcast %cst_11 : f32 to vector<128x256xf32>
    %16 = arith.maximumf %14, %15 : vector<128x256xf32>
    %17 = arith.truncf %16 : vector<128x256xf32> to vector<128x256xbf16>
    %c0_12 = arith.constant 0 : index
    %c0_13 = arith.constant 0 : index
    %18 = vector.load %arg6[%c0_12, %c0_13] : memref<256x256xbf16, #tpu.memory_space<vmem>>, vector<256x256xbf16>
    %cst_14 = arith.constant dense<0.000000e+00> : vector<128x256xf32>
    %19 = tpu.matmul %17, %18, %cst_14 {dimension_numbers = #tpu.dot_dimension_numbers<[1], [0], [0], [1], [0, 0, 1, 1], [], []>} : vector<128x256xbf16>, vector<256x256xbf16>, vector<128x256xf32> -> vector<128x256xf32>
    %c0_15 = arith.constant 0 : index
    %c0_16 = arith.constant 0 : index
    %20 = vector.load %arg7[%c0_15, %c0_16] : memref<1x256xf32, #tpu.memory_space<vmem>>, vector<1x256xf32>
    %21 = vector.broadcast %20 : vector<1x256xf32> to vector<128x256xf32>
    %22 = arith.addf %19, %21 : vector<128x256xf32>
    %cst_17 = arith.constant 0.000000e+00 : f32
    %23 = vector.broadcast %cst_17 : f32 to vector<128x256xf32>
    %24 = arith.maximumf %22, %23 : vector<128x256xf32>
    %25 = arith.truncf %24 : vector<128x256xf32> to vector<128x256xbf16>
    %c0_18 = arith.constant 0 : index
    %c0_19 = arith.constant 0 : index
    %26 = vector.load %arg8[%c0_18, %c0_19] : memref<256x128xbf16, #tpu.memory_space<vmem>>, vector<256x128xbf16>
    %cst_20 = arith.constant dense<0.000000e+00> : vector<128x128xf32>
    %27 = tpu.matmul %25, %26, %cst_20 {dimension_numbers = #tpu.dot_dimension_numbers<[1], [0], [0], [1], [0, 0, 1, 1], [], []>} : vector<128x256xbf16>, vector<256x128xbf16>, vector<128x128xf32> -> vector<128x128xf32>
    %c0_21 = arith.constant 0 : index
    %c0_22 = arith.constant 0 : index
    %28 = vector.load %arg9[%c0_21, %c0_22] : memref<1x128xf32, #tpu.memory_space<vmem>>, vector<1x128xf32>
    %29 = vector.broadcast %28 : vector<1x128xf32> to vector<128x128xf32>
    %30 = arith.addf %27, %29 : vector<128x128xf32>
    %cst_23 = arith.constant 0.000000e+00 : f32
    %31 = vector.broadcast %cst_23 : f32 to vector<128x128xf32>
    %32 = arith.maximumf %30, %31 : vector<128x128xf32>
    %33 = arith.truncf %32 : vector<128x128xf32> to vector<128x128xbf16>
    %c0_24 = arith.constant 0 : index
    %c0_25 = arith.constant 0 : index
    %34 = vector.load %arg10[%c0_24, %c0_25] : memref<128x128xbf16, #tpu.memory_space<vmem>>, vector<128x128xbf16>
    %cst_26 = arith.constant dense<0.000000e+00> : vector<128x128xf32>
    %35 = tpu.matmul %33, %34, %cst_26 {dimension_numbers = #tpu.dot_dimension_numbers<[1], [0], [0], [1], [0, 0, 1, 1], [], []>} : vector<128x128xbf16>, vector<128x128xbf16>, vector<128x128xf32> -> vector<128x128xf32>
    %c0_27 = arith.constant 0 : index
    %c0_28 = arith.constant 0 : index
    %36 = vector.load %arg11[%c0_27, %c0_28] : memref<1x128xf32, #tpu.memory_space<vmem>>, vector<1x128xf32>
    %37 = vector.broadcast %36 : vector<1x128xf32> to vector<128x128xf32>
    %38 = arith.addf %35, %37 : vector<128x128xf32>
    %c0_29 = arith.constant 0 : index
    %c0_30 = arith.constant 0 : index
    %39 = vector.load %arg12[%c0_29, %c0_30] : memref<128x128xf32, #tpu.memory_space<vmem>>, vector<128x128xf32>
    tpu.vector_store %arg12[%c0_29, %c0_30], %38 {strides = array<i32>} : memref<128x128xf32, #tpu.memory_space<vmem>>, vector<128x128xf32>,
    return
  }
  func.func @transform_0(%arg0: i32) -> (i32, i32) {
    %c0_i32 = arith.constant 0 : i32
    %c0_i32_0 = arith.constant 0 : i32
    return %arg0, %c0_i32 : i32, i32
  }
  func.func @transform_1(%arg0: i32) -> (i32, i32) {
    %c0_i32 = arith.constant 0 : i32
    %c0_i32_0 = arith.constant 0 : i32
    %c0_i32_1 = arith.constant 0 : i32
    return %c0_i32, %c0_i32_0 : i32, i32
  }
  func.func @transform_2(%arg0: i32) -> (i32, i32) {
    %c0_i32 = arith.constant 0 : i32
    %c0_i32_0 = arith.constant 0 : i32
    %c0_i32_1 = arith.constant 0 : i32
    return %c0_i32, %c0_i32_0 : i32, i32
  }
  func.func @transform_3(%arg0: i32) -> (i32, i32) {
    %c0_i32 = arith.constant 0 : i32
    %c0_i32_0 = arith.constant 0 : i32
    %c0_i32_1 = arith.constant 0 : i32
    return %c0_i32, %c0_i32_0 : i32, i32
  }
  func.func @transform_4(%arg0: i32) -> (i32, i32) {
    %c0_i32 = arith.constant 0 : i32
    %c0_i32_0 = arith.constant 0 : i32
    %c0_i32_1 = arith.constant 0 : i32
    return %c0_i32, %c0_i32_0 : i32, i32
  }
  func.func @transform_5(%arg0: i32) -> (i32, i32) {
    %c0_i32 = arith.constant 0 : i32
    %c0_i32_0 = arith.constant 0 : i32
    %c0_i32_1 = arith.constant 0 : i32
    return %c0_i32, %c0_i32_0 : i32, i32
  }
  func.func @transform_6(%arg0: i32) -> (i32, i32) {
    %c0_i32 = arith.constant 0 : i32
    %c0_i32_0 = arith.constant 0 : i32
    %c0_i32_1 = arith.constant 0 : i32
    return %c0_i32, %c0_i32_0 : i32, i32
  }
  func.func @transform_7(%arg0: i32) -> (i32, i32) {
    %c0_i32 = arith.constant 0 : i32
    %c0_i32_0 = arith.constant 0 : i32
    %c0_i32_1 = arith.constant 0 : i32
    return %c0_i32, %c0_i32_0 : i32, i32
  }
  func.func @transform_8(%arg0: i32) -> (i32, i32) {
    %c0_i32 = arith.constant 0 : i32
    %c0_i32_0 = arith.constant 0 : i32
    %c0_i32_1 = arith.constant 0 : i32
    return %c0_i32, %c0_i32_0 : i32, i32
  }
  func.func @transform_9(%arg0: i32) -> (i32, i32) {
    %c0_i32 = arith.constant 0 : i32
    %c0_i32_0 = arith.constant 0 : i32
    %c0_i32_1 = arith.constant 0 : i32
    return %c0_i32, %c0_i32_0 : i32, i32
  }
  func.func @transform_10(%arg0: i32) -> (i32, i32) {
    %c0_i32 = arith.constant 0 : i32
    %c0_i32_0 = arith.constant 0 : i32
    %c0_i32_1 = arith.constant 0 : i32
    return %c0_i32, %c0_i32_0 : i32, i32
  }
  func.func @transform_11(%arg0: i32) -> (i32, i32) {
    %c0_i32 = arith.constant 0 : i32
    %c0_i32_0 = arith.constant 0 : i32
    return %arg0, %c0_i32 : i32, i32
  }
}

</mosaic_0001>

<bundles_post_ra>
// kernel: tpu_custom_call.1
= control target key start
LH: loop header
LB: loop body
LE: loop exit
PB: predicated region body
PF: predicated region fallthrough
CT: control target
= control target key end

     0   :  { %16 = vsyncpa [#allocation3], 0  ;;  %s4554_s0 = inlined_call_operand.hbm [shape: f32[128,512], index: 0, kind: input, shape index: {}]   ;;  %s4555_s1 = inlined_call_operand.hbm [shape: bf16[512,512], index: 1, kind: input, shape index: {}]   ;;  %s4556_s2 = inlined_call_operand.vmem [shape: f32[1,512], index: 2, kind: input, shape index: {}]   ;;  %s4557_s3 = inlined_call_operand.hbm [shape: bf16[512,256], index: 3, kind: input, shape index: {}]   ;;  %s4558_s4 = inlined_call_operand.vmem [shape: f32[1,256], index: 4, kind: input, shape index: {}]   ;;  %s4559_s5 = inlined_call_operand.hbm [shape: bf16[256,256], index: 5, kind: input, shape index: {}]   ;;  %s4560_s6 = inlined_call_operand.vmem [shape: f32[1,256], index: 6, kind: input, shape index: {}]   ;;  %s4561_s7 = inlined_call_operand.hbm [shape: bf16[256,128], index: 7, kind: input, shape index: {}]   ;;  %s4562_s8 = inlined_call_operand.vmem [shape: f32[1,128], index: 8, kind: input, shape index: {}]   ;;  %s4563_s9 = inlined_call_operand.hbm [shape: bf16[128,128], index: 9, kind: input, shape index: {}]   ;;  %s4564_s10 = inlined_call_operand.vmem [shape: f32[1,128], index: 10, kind: input, shape index: {}]   ;;  %s4565_s11 = inlined_call_operand.hbm [shape: f32[128,128], index: 11, kind: output, shape index: {}]  }
   0x1   :  { %17 = vsyncpa [#allocation6], 0 }
   0x2   :  { %18 = vsyncpa [#allocation9], 0 }
   0x3   :  { %19 = vsyncpa [#allocation12], 0 }
   0x4   :  { %20 = vsyncpa [#allocation4], 0  ;;  %s4160_s17 = smov [#allocation5]   ;;  %s3996_s21 = scalar_lea.hbm %s4555_s1, 16384 }
   0x5   :  { %s38_s18 = sshll.u32 %s4160_s17, 4  ;;  %p3997_p0 = scmp.ne.s32.totalorder %s4555_s1, %s3996_s21  ;;  %s39_s18 = int_to_ptr.vmem [resolvable:$true] %s38_s18 }
   0x6   :  { %p4000_p1 = scmp.lt.u32.totalorder %s3996_s21, %s4555_s1 }
   0x8   :  { %p4002_p2 = pnand %p4000_p1, %p3997_p0 }
   0xa   :  { %4005 = shalt.err (!%p4002_p2)
}
   0xb   :  { %s4006_s26 = scalar_lea.vmem %s39_s18, 16384  ;;  %p4011_p4 = scmp.lt.s32.totalorder %s39_s18, %s39_s18 }
   0xc   :  { %p4007_p3 = scmp.ne.s32.totalorder %s39_s18, %s4006_s26  ;;  %p4012_p5 = scmp.lt.s32.totalorder %s4006_s26, %s4006_s26 }
   0xe   :  { %p4013_p6 = por %p4012_p5, %p4011_p4 }
  0x10   :  { %p4014_p7 = pnand %p4013_p6, %p4007_p3 }
  0x12   :  { %4017 = shalt.err (!%p4014_p7)
}
  0x13   :  { %s4161_s27 = smov 256   ;;  %s4162_s28 = smov 16  }
  0x14   :  { %44 = dma.hbm_to_vmem [thread:$0]  %s4555_s1, 16384, %s39_s18, [#allocation6], %s4161_s27, %s4161_s27, %s4162_s28  }
  0x15   :  { %s4163_s12 = smov [#allocation8]   ;;  %s4164_s14 = smov [#allocation2]  }
  0x16   :  { %s66_s13 = sshll.u32 %s4163_s12, 4  ;;  %s26_s15 = sshll.u32 %s4164_s14, 4  ;;  %s67_s13 = int_to_ptr.vmem [resolvable:$true] %s66_s13  ;;  %s27_s15 = int_to_ptr.vmem [resolvable:$true] %s26_s15 }
  0x17   :  { %s4018_s19 = scalar_lea.hbm %s4559_s5, 4096 }
  0x18   :  { %p4019_p8 = scmp.ne.s32.totalorder %s4559_s5, %s4018_s19  ;;  %p4022_p9 = scmp.lt.u32.totalorder %s4018_s19, %s4559_s5 }
  0x1a   :  { %p4024_p10 = pnand %p4022_p9, %p4019_p8 }
  0x1c   :  { %4027 = shalt.err (!%p4024_p10)
}
  0x1d   :  { %s4028_s1 = scalar_lea.vmem %s67_s13, 4096  ;;  %p4033_p12 = scmp.lt.s32.totalorder %s67_s13, %s67_s13 }
  0x1e   :  { %p4029_p11 = scmp.ne.s32.totalorder %s67_s13, %s4028_s1  ;;  %p4034_p13 = scmp.lt.s32.totalorder %s4028_s1, %s4028_s1 }
  0x20   :  { %p4035_p0 = por %p4034_p13, %p4033_p12 }
  0x22   :  { %p4036_p1 = pnand %p4035_p0, %p4029_p11 }
  0x24   :  { %4039 = shalt.err (!%p4036_p1)
}
  0x25   :  { %s4165_s18 = smov 128   ;;  %s4166_s24 = smov 8  }
  0x26   :  { %72 = dma.hbm_to_vmem [thread:$0]  %s4559_s5, 4096, %s67_s13, [#allocation9], %s4165_s18, %s4165_s18, %s4166_s24  }
  0x27   :  { %s4040_s29 = scalar_lea.hbm %s4554_s0, 8192 }
  0x28   :  { %p4041_p2 = scmp.ne.s32.totalorder %s4554_s0, %s4040_s29  ;;  %p4044_p3 = scmp.lt.u32.totalorder %s4040_s29, %s4554_s0 }
  0x2a   :  { %p4046_p4 = pnand %p4044_p3, %p4041_p2 }
  0x2c   :  { %4049 = shalt.err (!%p4046_p4)
}
  0x2d   :  { %s4050_s17 = scalar_lea.vmem %s27_s15, 8192  ;;  %p4055_p6 = scmp.lt.s32.totalorder %s27_s15, %s27_s15 }
  0x2e   :  { %p4051_p5 = scmp.ne.s32.totalorder %s27_s15, %s4050_s17  ;;  %p4056_p7 = scmp.lt.s32.totalorder %s4050_s17, %s4050_s17 }
  0x30   :  { %p4057_p8 = por %p4056_p7, %p4055_p6 }
  0x32   :  { %p4058_p9 = pnand %p4057_p8, %p4051_p5 }
  0x34   :  { %4061 = shalt.err (!%p4058_p9)
}
  0x35   :  { %s4167_s5 = smov 512   ;;  %s4168_s13 = smov 32  }
  0x36   :  { %32 = dma.hbm_to_vmem [thread:$0]  %s4554_s0, 8192, %s27_s15, [#allocation3], %s4167_s5, %s4167_s5, %s4168_s13  }
  0x37   :  { %s4169_s21 = smov [#allocation7]   ;;  %s4170_s23 = smov [#allocation10]  }
  0x38   :  { %s52_s22 = sshll.u32 %s4169_s21, 4  ;;  %s80_s1 = sshll.u32 %s4170_s23, 4  ;;  %s53_s22 = int_to_ptr.vmem [resolvable:$true] %s52_s22  ;;  %s81_s1 = int_to_ptr.vmem [resolvable:$true] %s80_s1 }
  0x39   :  { %s4062_s27 = scalar_lea.hbm %s4557_s3, 8192 }
  0x3a   :  { %p4063_p10 = scmp.ne.s32.totalorder %s4557_s3, %s4062_s27  ;;  %p4066_p11 = scmp.lt.u32.totalorder %s4062_s27, %s4557_s3 }
  0x3c   :  { %p4068_p12 = pnand %p4066_p11, %p4063_p10 }
  0x3e   :  { %4071 = shalt.err (!%p4068_p12)
}
  0x3f   :  { %s4072_s0 = scalar_lea.vmem %s53_s22, 8192  ;;  %p4077_p0 = scmp.lt.s32.totalorder %s53_s22, %s53_s22 }
  0x40   :  { %p4073_p13 = scmp.ne.s32.totalorder %s53_s22, %s4072_s0  ;;  %p4078_p1 = scmp.lt.s32.totalorder %s4072_s0, %s4072_s0 }
  0x42   :  { %p4079_p2 = por %p4078_p1, %p4077_p0 }
  0x44   :  { %p4080_p3 = pnand %p4079_p2, %p4073_p13 }
  0x46   :  { %4083 = shalt.err (!%p4080_p3)
}
  0x47   :  { %58 = dma.hbm_to_vmem [thread:$0]  %s4557_s3, 8192, %s53_s22, [#allocation6], %s4165_s18, %s4165_s18, %s4166_s24  }
  0x48   :  { %s4084_s5 = scalar_lea.hbm %s4561_s7, 2048 }
  0x49   :  { %p4085_p4 = scmp.ne.s32.totalorder %s4561_s7, %s4084_s5  ;;  %p4088_p5 = scmp.lt.u32.totalorder %s4084_s5, %s4561_s7 }
  0x4b   :  { %p4090_p6 = pnand %p4088_p5, %p4085_p4 }
  0x4d   :  { %4093 = shalt.err (!%p4090_p6)
}
  0x4e   :  { %s4094_s23 = scalar_lea.vmem %s81_s1, 2048  ;;  %p4099_p8 = scmp.lt.s32.totalorder %s81_s1, %s81_s1 }
  0x4f   :  { %p4095_p7 = scmp.ne.s32.totalorder %s81_s1, %s4094_s23  ;;  %p4100_p9 = scmp.lt.s32.totalorder %s4094_s23, %s4094_s23 }
  0x51   :  { %p4101_p10 = por %p4100_p9, %p4099_p8 }
  0x53   :  { %p4102_p11 = pnand %p4101_p10, %p4095_p7 }
  0x55   :  { %4105 = shalt.err (!%p4102_p11)
}
  0x56   :  { %s4171_s3 = smov 64   ;;  %s4172_s22 = smov 4  }
  0x57   :  { %86 = dma.hbm_to_vmem [thread:$0]  %s4561_s7, 2048, %s81_s1, [#allocation9], %s4171_s3, %s4171_s3, %s4172_s22  }
  0x58   :  { %s4173_s27 = smov [#allocation11]   ;;  %s4106_s12 = scalar_lea.hbm %s4563_s9, 1024 }
  0x59   :  { %s94_s28 = sshll.u32 %s4173_s27, 4  ;;  %p4107_p12 = scmp.ne.s32.totalorder %s4563_s9, %s4106_s12  ;;  %s95_s28 = int_to_ptr.vmem [resolvable:$true] %s94_s28 }
  0x5a   :  { %p4110_p13 = scmp.lt.u32.totalorder %s4106_s12, %s4563_s9 }
  0x5c   :  { %p4112_p0 = pnand %p4110_p13, %p4107_p12 }
  0x5e   :  { %4115 = shalt.err (!%p4112_p0)
}
  0x5f   :  { %s4116_s17 = scalar_lea.vmem %s95_s28, 1024  ;;  %p4121_p2 = scmp.lt.s32.totalorder %s95_s28, %s95_s28 }
  0x60   :  { %p4117_p1 = scmp.ne.s32.totalorder %s95_s28, %s4116_s17  ;;  %p4122_p3 = scmp.lt.s32.totalorder %s4116_s17, %s4116_s17 }
  0x62   :  { %p4123_p4 = por %p4122_p3, %p4121_p2 }
  0x64   :  { %p4124_p5 = pnand %p4123_p4, %p4117_p1 }
  0x66   :  { %4127 = shalt.err (!%p4124_p5)
}
  0x67   :  { %100 = dma.hbm_to_vmem [thread:$0]  %s4563_s9, 1024, %s95_s28, [#allocation12], %s4171_s3, %s4171_s3, %s4172_s22  }
  0x68   :  { %4150 = dma.done.wait [#allocation3], 8192  }
  0x69   :  { %4151 = vsyncadd [#allocation3], 4294959104 }
  0x6a   :  { %4152 = dma.done.wait [#allocation6], 24576  }
  0x6b   :  { %4153 = vsyncadd [#allocation6], 4294942720 }
  0x6c   :  { %4154 = dma.done.wait [#allocation9], 6144  }
  0x6d   :  { %4155 = vsyncadd [#allocation9], 4294961152 }
  0x6e   :  { %4156 = dma.done.wait [#allocation12], 1024  }
  0x6f   :  { %4157 = vsyncadd [#allocation12], 4294966272  ;;  %v3636_v0 = vld [vmem:[#allocation5 + $0x4] ss:$16 sps:$4 sm:$0xff]   ;;  %v3638_v1 = vld [vmem:[#allocation5 + $0xc] ss:$16 sps:$4 sm:$0xff]  }
  0x70   :  { %1008 = vmatprep.subr.bf16.mxu0 %v3636_v0  ;;  %v3640_v2 = vld [vmem:[#allocation5] ss:$16 sps:$4 sm:$0xff]   ;;  %v3641_v3 = vld [vmem:[#allocation5 + $0x8] ss:$16 sps:$4 sm:$0xff]   ;;  %1234 = vmatprep.subr.bf16.mxu1 %v3638_v1  ;;  %v3642_v4 = vld [vmem:[#allocation5 + $0x24] ss:$16 sps:$4 sm:$0xff]  }
  0x71   :  { %1009 = vmatpush1.bf16.msra.mxu0 %v3640_v2  ;;  %1235 = vmatpush1.bf16.msra.mxu1 %v3641_v3  ;;  %v3644_v5 = vld [vmem:[#allocation5 + $0x2c] ss:$16 sps:$4 sm:$0xff]   ;;  %v3646_v6 = vld [vmem:[#allocation5 + $0x20] ss:$16 sps:$4 sm:$0xff]   ;;  %v3647_v7 = vld [vmem:[#allocation5 + $0x28] ss:$16 sps:$4 sm:$0xff]  }
  0x72   :  { %1010 = vmatprep.subr.bf16.mxu0 %v3642_v4  ;;  %1236 = vmatprep.subr.bf16.mxu1 %v3644_v5  ;;  %v3648_v8 = vld [vmem:[#allocation5 + $0x44] ss:$16 sps:$4 sm:$0xff]   ;;  %v3650_v9 = vld [vmem:[#allocation5 + $0x4c] ss:$16 sps:$4 sm:$0xff]   ;;  %v3652_v10 = vld [vmem:[#allocation5 + $0x40] ss:$16 sps:$4 sm:$0xff]  }
  0x73   :  { %v3653_v11 = vld [vmem:[#allocation5 + $0x48] ss:$16 sps:$4 sm:$0xff]   ;;  %v3654_v12 = vld [vmem:[#allocation5 + $0x64] ss:$16 sps:$4 sm:$0xff]   ;;  %v3656_v13 = vld [vmem:[#allocation5 + $0x6c] ss:$16 sps:$4 sm:$0xff]  }
  0x74   :  { %v3658_v14 = vld [vmem:[#allocation5 + $0x60] ss:$16 sps:$4 sm:$0xff]   ;;  %v3659_v15 = vld [vmem:[#allocation5 + $0x68] ss:$16 sps:$4 sm:$0xff]   ;;  %v3660_v16 = vld [vmem:[#allocation5 + $0x84] ss:$16 sps:$4 sm:$0xff]  }
  0x75   :  { %1011 = vmatpush1.bf16.msra.mxu0 %v3646_v6  ;;  %1237 = vmatpush1.bf16.msra.mxu1 %v3647_v7  ;;  %v3662_v17 = vld [vmem:[#allocation5 + $0x8c] ss:$16 sps:$4 sm:$0xff]   ;;  %v3664_v18 = vld [vmem:[#allocation5 + $0x80] ss:$16 sps:$4 sm:$0xff]   ;;  %v3665_v19 = vld [vmem:[#allocation5 + $0x88] ss:$16 sps:$4 sm:$0xff]  }
  0x76   :  { %1012 = vmatprep.subr.bf16.mxu0 %v3648_v8  ;;  %1238 = vmatprep.subr.bf16.mxu1 %v3650_v9  ;;  %v3666_v20 = vld [vmem:[#allocation5 + $0xa4] ss:$16 sps:$4 sm:$0xff]   ;;  %v3668_v21 = vld [vmem:[#allocation5 + $0xac] ss:$16 sps:$4 sm:$0xff]   ;;  %v3670_v22 = vld [vmem:[#allocation5 + $0xa0] ss:$16 sps:$4 sm:$0xff]  }
  0x77   :  { %v3671_v23 = vld [vmem:[#allocation5 + $0xa8] ss:$16 sps:$4 sm:$0xff]   ;;  %v3672_v24 = vld [vmem:[#allocation5 + $0xc4] ss:$16 sps:$4 sm:$0xff]   ;;  %v3674_v25 = vld [vmem:[#allocation5 + $0xcc] ss:$16 sps:$4 sm:$0xff]  }
  0x78   :  { %v3676_v26 = vld [vmem:[#allocation5 + $0xc0] ss:$16 sps:$4 sm:$0xff]   ;;  %v3677_v27 = vld [vmem:[#allocation5 + $0xc8] ss:$16 sps:$4 sm:$0xff]   ;;  %v3678_v28 = vld [vmem:[#allocation5 + $0xe4] ss:$16 sps:$4 sm:$0xff]  }
  0x79   :  { %1013 = vmatpush1.bf16.msra.mxu0 %v3652_v10  ;;  %1239 = vmatpush1.bf16.msra.mxu1 %v3653_v11  ;;  %v3680_v29 = vld [vmem:[#allocation5 + $0xec] ss:$16 sps:$4 sm:$0xff]   ;;  %v3682_v30 = vld [vmem:[#allocation5 + $0xe0] ss:$16 sps:$4 sm:$0xff]   ;;  %v3683_v31 = vld [vmem:[#allocation5 + $0xe8] ss:$16 sps:$4 sm:$0xff]  }
  0x7a   :  { %1014 = vmatprep.subr.bf16.mxu0 %v3654_v12  ;;  %1240 = vmatprep.subr.bf16.mxu1 %v3656_v13  ;;  %v3684_v32 = vld [vmem:[#allocation5 + $0x104] ss:$16 sps:$4 sm:$0xff]   ;;  %v3686_v33 = vld [vmem:[#allocation5 + $0x10c] ss:$16 sps:$4 sm:$0xff]   ;;  %v3688_v34 = vld [vmem:[#allocation5 + $0x100] ss:$16 sps:$4 sm:$0xff]  }
  0x7b   :  { %v3689_v35 = vld [vmem:[#allocation5 + $0x108] ss:$16 sps:$4 sm:$0xff]   ;;  %v3690_v36 = vld [vmem:[#allocation5 + $0x124] ss:$16 sps:$4 sm:$0xff]   ;;  %v3692_v37 = vld [vmem:[#allocation5 + $0x12c] ss:$16 sps:$4 sm:$0xff]  }
  0x7c   :  { %v3694_v38 = vld [vmem:[#allocation5 + $0x120] ss:$16 sps:$4 sm:$0xff]   ;;  %v3695_v39 = vld [vmem:[#allocation5 + $0x128] ss:$16 sps:$4 sm:$0xff]   ;;  %v3696_v40 = vld [vmem:[#allocation5 + $0x144] ss:$16 sps:$4 sm:$0xff]  }
  0x7d   :  { %1015 = vmatpush1.bf16.msra.mxu0 %v3658_v14  ;;  %1241 = vmatpush1.bf16.msra.mxu1 %v3659_v15  ;;  %v3698_v41 = vld [vmem:[#allocation5 + $0x14c] ss:$16 sps:$4 sm:$0xff]   ;;  %v3700_v42 = vld [vmem:[#allocation5 + $0x140] ss:$16 sps:$4 sm:$0xff]   ;;  %v3701_v43 = vld [vmem:[#allocation5 + $0x148] ss:$16 sps:$4 sm:$0xff]  }
  0x7e   :  { %1016 = vmatprep.subr.bf16.mxu0 %v3660_v16  ;;  %1242 = vmatprep.subr.bf16.mxu1 %v3662_v17  ;;  %v3702_v44 = vld [vmem:[#allocation5 + $0x164] ss:$16 sps:$4 sm:$0xff]   ;;  %v3704_v45 = vld [vmem:[#allocation5 + $0x16c] ss:$16 sps:$4 sm:$0xff]   ;;  %v3706_v47 = vld [vmem:[#allocation5 + $0x160] ss:$16 sps:$4 sm:$0xff]  }
  0x7f   :  { %v123_v46 = vld [vmem:[#allocation2 + $0x8] sm:$0xff]  ;;  %v3708_v50 = vld [vmem:[#allocation5 + $0x184] ss:$16 sps:$4 sm:$0xff]   ;;  %v3712_v53 = vld [vmem:[#allocation5 + $0x180] ss:$16 sps:$4 sm:$0xff]  }
  0x80   :  { %v3707_v48 = vld [vmem:[#allocation5 + $0x168] ss:$16 sps:$4 sm:$0xff]   ;;  %v3710_v52 = vld [vmem:[#allocation5 + $0x18c] ss:$16 sps:$4 sm:$0xff]   ;;  %v3714_v55 = vld [vmem:[#allocation5 + $0x1a4] ss:$16 sps:$4 sm:$0xff]  }
  0x81   :  { %1017 = vmatpush1.bf16.msra.mxu0 %v3664_v18  ;;  %1243 = vmatpush1.bf16.msra.mxu1 %v3665_v19  ;;  %v127_v49 = vld [vmem:[#allocation2 + $0x28] sm:$0xff]  ;;  %v3718_v57 = vld [vmem:[#allocation5 + $0x1a0] ss:$16 sps:$4 sm:$0xff]   ;;  %v3720_v59 = vld [vmem:[#allocation5 + $0x1c4] ss:$16 sps:$4 sm:$0xff]  }
  0x82   :  { %1018 = vmatprep.subr.bf16.mxu0 %v3666_v20  ;;  %1244 = vmatprep.subr.bf16.mxu1 %v3668_v21  ;;  %v187_v51 = vpack.c.bf16 %v127_v49, %v123_v46  ;;  %v3713_v54 = vld [vmem:[#allocation5 + $0x188] ss:$16 sps:$4 sm:$0xff]   ;;  %v3716_v56 = vld [vmem:[#allocation5 + $0x1ac] ss:$16 sps:$4 sm:$0xff]   ;;  %v3724_v61 = vld [vmem:[#allocation5 + $0x1c0] ss:$16 sps:$4 sm:$0xff]  }
  0x83   :  { %v3719_v58 = vld [vmem:[#allocation5 + $0x1a8] ss:$16 sps:$4 sm:$0xff]   ;;  %v3722_v60 = vld [vmem:[#allocation5 + $0x1cc] ss:$16 sps:$4 sm:$0xff]   ;;  %v3726_v63 = vld [vmem:[#allocation5 + $0x1e4] ss:$16 sps:$4 sm:$0xff]  }
  0x84   :  { %1040 = vmatprep.mubr.bf16.mxu0 %v187_v51  ;;  %1266 = vmatprep.mubr.bf16.mxu1 %v187_v51  ;;  %v3725_v62 = vld [vmem:[#allocation5 + $0x1c8] ss:$16 sps:$4 sm:$0xff]   ;;  %v3728_v0 = vld [vmem:[#allocation5 + $0x1ec] ss:$16 sps:$4 sm:$0xff]   ;;  %v3730_v1 = vld [vmem:[#allocation5 + $0x1e0] ss:$16 sps:$4 sm:$0xff]  }
  0x85   :  { %1019 = vmatpush1.bf16.msra.mxu0 %v3670_v22  ;;  %1245 = vmatpush1.bf16.msra.mxu1 %v3671_v23  ;;  %v3731_v2 = vld [vmem:[#allocation5 + $0x1e8] ss:$16 sps:$4 sm:$0xff]   ;;  %v122_v3 = vld [vmem:[#allocation2] sm:$0xff]  ;;  %v3737_v6 = vld [vmem:[#allocation5 + $0x20c] ss:$16 sps:$4 sm:$0xff]  }
  0x86   :  { %1020 = vmatprep.subr.bf16.mxu0 %v3672_v24  ;;  %1246 = vmatprep.subr.bf16.mxu1 %v3674_v25  ;;  %v126_v4 = vld [vmem:[#allocation2 + $0x20] sm:$0xff]  ;;  %v3735_v9 = vld [vmem:[#allocation5 + $0x208] ss:$16 sps:$4 sm:$0xff]   ;;  %v3743_v13 = vld [vmem:[#allocation5 + $0x22c] ss:$16 sps:$4 sm:$0xff]  }
  0x87   :  { %v3734_v5 = vld [vmem:[#allocation5 + $0x204] ss:$16 sps:$4 sm:$0xff]   ;;  %v3732_v7 = vld [vmem:[#allocation5 + $0x200] ss:$16 sps:$4 sm:$0xff]   ;;  %v186_v8 = vpack.c.bf16 %v126_v4, %v122_v3  ;;  %v131_v10 = vld [vmem:[#allocation2 + $0x48] sm:$0xff] }
  0x88   :  { %v135_v11 = vld [vmem:[#allocation2 + $0x68] sm:$0xff]  ;;  %v3740_v12 = vld [vmem:[#allocation5 + $0x224] ss:$16 sps:$4 sm:$0xff]   ;;  %v3738_v14 = vld [vmem:[#allocation5 + $0x220] ss:$16 sps:$4 sm:$0xff]  }
  0x89   :  { %1021 = vmatpush1.bf16.msra.mxu0 %v3676_v26  ;;  %1247 = vmatpush1.bf16.msra.mxu1 %v3677_v27  ;;  %v191_v15 = vpack.c.bf16 %v135_v11, %v131_v10  ;;  %v3741_v16 = vld [vmem:[#allocation5 + $0x228] ss:$16 sps:$4 sm:$0xff]   ;;  %v130_v17 = vld [vmem:[#allocation2 + $0x40] sm:$0xff]  ;;  %v3749_v20 = vld [vmem:[#allocation5 + $0x24c] ss:$16 sps:$4 sm:$0xff]  }
  0x8a   :  { %1022 = vmatprep.subr.bf16.mxu0 %v3678_v28  ;;  %1248 = vmatprep.subr.bf16.mxu1 %v3680_v29  ;;  %v134_v18 = vld [vmem:[#allocation2 + $0x60] sm:$0xff]  ;;  %v3747_v22 = vld [vmem:[#allocation5 + $0x248] ss:$16 sps:$4 sm:$0xff]   ;;  %v3755_v27 = vld [vmem:[#allocation5 + $0x26c] ss:$16 sps:$4 sm:$0xff]  }
  0x8b   :  { %v3746_v19 = vld [vmem:[#allocation5 + $0x244] ss:$16 sps:$4 sm:$0xff]   ;;  %v3744_v21 = vld [vmem:[#allocation5 + $0x240] ss:$16 sps:$4 sm:$0xff]   ;;  %v190_v23 = vpack.c.bf16 %v134_v18, %v130_v17  ;;  %v139_v24 = vld [vmem:[#allocation2 + $0x88] sm:$0xff] }
  0x8c   :  { %v143_v25 = vld [vmem:[#allocation2 + $0xa8] sm:$0xff]  ;;  %v3752_v26 = vld [vmem:[#allocation5 + $0x264] ss:$16 sps:$4 sm:$0xff]   ;;  %v3750_v29 = vld [vmem:[#allocation5 + $0x260] ss:$16 sps:$4 sm:$0xff]  }
  0x8d   :  { %1023 = vmatpush1.bf16.msra.mxu0 %v3682_v30  ;;  %1249 = vmatpush1.bf16.msra.mxu1 %v3683_v31  ;;  %v195_v28 = vpack.c.bf16 %v143_v25, %v139_v24  ;;  %v3753_v30 = vld [vmem:[#allocation5 + $0x268] ss:$16 sps:$4 sm:$0xff]   ;;  %v138_v31 = vld [vmem:[#allocation2 + $0x80] sm:$0xff] }
  0x8e   :  { %1024 = vmatprep.subr.bf16.mxu0 %v3684_v32  ;;  %1250 = vmatprep.subr.bf16.mxu1 %v3686_v33  ;;  %v142_v32 = vld [vmem:[#allocation2 + $0xa0] sm:$0xff]  ;;  %v155_v51 = vld [vmem:[#allocation2 + $0x108] sm:$0xff] }
  0x8f   :  { %v3758_v33 = vld [vmem:[#allocation5 + $0x284] ss:$16 sps:$4 sm:$0xff]   ;;  %v3768_v49 = vld [vmem:[#allocation5 + $0x2c0] ss:$16 sps:$4 sm:$0xff]   ;;  %v3783_v3 = vld [vmem:[#allocation5 + $0x308] ss:$16 sps:$4 sm:$0xff]  }
  0x90   :  { %v150_v46 = vld [vmem:[#allocation2 + $0xe0] sm:$0xff]  ;;  %v3795_v17 = vld [vmem:[#allocation5 + $0x348] ss:$16 sps:$4 sm:$0xff]  }
  0x91   :  { %1025 = vmatpush1.bf16.msra.mxu0 %v3688_v34  ;;  %1251 = vmatpush1.bf16.msra.mxu1 %v3689_v35  ;;  %v3761_v34 = vld [vmem:[#allocation5 + $0x28c] ss:$16 sps:$4 sm:$0xff]   ;;  %v3756_v35 = vld [vmem:[#allocation5 + $0x280] ss:$16 sps:$4 sm:$0xff]   ;;  %v3788_v4 = vld [vmem:[#allocation5 + $0x324] ss:$16 sps:$4 sm:$0xff]  }
  0x92   :  { %1026 = vmatprep.subr.bf16.mxu0 %v3690_v36  ;;  %1252 = vmatprep.subr.bf16.mxu1 %v3692_v37  ;;  %v3759_v36 = vld [vmem:[#allocation5 + $0x288] ss:$16 sps:$4 sm:$0xff]   ;;  %v194_v37 = vpack.c.bf16 %v142_v32, %v138_v31  ;;  %v166_v10 = vld [vmem:[#allocation2 + $0x160] sm:$0xff] }
  0x93   :  { %v3794_v11 = vld [vmem:[#allocation5 + $0x344] ss:$16 sps:$4 sm:$0xff]   ;;  %v183_v31 = vld [vmem:[#allocation2 + $0x1e8] sm:$0xff] }
  0x94   :  { %v3800_v18 = vld [vmem:[#allocation5 + $0x364] ss:$16 sps:$4 sm:$0xff]  }
  0x95   :  { %1027 = vmatpush1.bf16.msra.mxu0 %v3694_v38  ;;  %1253 = vmatpush1.bf16.msra.mxu1 %v3695_v39  ;;  %v147_v38 = vld [vmem:[#allocation2 + $0xc8] sm:$0xff]  ;;  %v174_v24 = vld [vmem:[#allocation2 + $0x1a0] sm:$0xff] }
  0x96   :  { %1028 = vmatprep.subr.bf16.mxu0 %v3696_v40  ;;  %1254 = vmatprep.subr.bf16.mxu1 %v3698_v41  ;;  %v151_v39 = vld [vmem:[#allocation2 + $0xe8] sm:$0xff]  ;;  %v3764_v40 = vld [vmem:[#allocation5 + $0x2a4] ss:$16 sps:$4 sm:$0xff]  }
  0x97   :  { %v3767_v41 = vld [vmem:[#allocation5 + $0x2ac] ss:$16 sps:$4 sm:$0xff]   ;;  %v3806_v25 = vld [vmem:[#allocation5 + $0x384] ss:$16 sps:$4 sm:$0xff]  }
  0x98   :  { %v3812_v32 = vld [vmem:[#allocation5 + $0x3a4] ss:$16 sps:$4 sm:$0xff]  }
  0x99   :  { %1029 = vmatpush1.bf16.msra.mxu0 %v3700_v42  ;;  %1255 = vmatpush1.bf16.msra.mxu1 %v3701_v43  ;;  %v3762_v42 = vld [vmem:[#allocation5 + $0x2a0] ss:$16 sps:$4 sm:$0xff]   ;;  %v199_v43 = vpack.c.bf16 %v151_v39, %v147_v38  ;;  %v3818_v39 = vld [vmem:[#allocation5 + $0x3c4] ss:$16 sps:$4 sm:$0xff]  }
  0x9a   :  { %1030 = vmatprep.subr.bf16.mxu0 %v3702_v44  ;;  %1256 = vmatprep.subr.bf16.mxu1 %v3704_v45  ;;  %v3765_v44 = vld [vmem:[#allocation5 + $0x2a8] ss:$16 sps:$4 sm:$0xff]   ;;  %v146_v45 = vld [vmem:[#allocation2 + $0xc0] sm:$0xff] }
  0x9b   :  { %v182_v38 = vld [vmem:[#allocation2 + $0x1e0] sm:$0xff] }
  0x9d   :  { %1031 = vmatpush1.bf16.msra.mxu0 %v3706_v47  ;;  %1257 = vmatpush1.bf16.msra.mxu1 %v3707_v48  ;;  %v3770_v47 = vld [vmem:[#allocation5 + $0x2c4] ss:$16 sps:$4 sm:$0xff]   ;;  %v3773_v48 = vld [vmem:[#allocation5 + $0x2cc] ss:$16 sps:$4 sm:$0xff]  }
  0x9e   :  { %1032 = vmatprep.subr.bf16.mxu0 %v3708_v50  ;;  %1258 = vmatprep.subr.bf16.mxu1 %v3710_v52  ;;  %v198_v50 = vpack.c.bf16 %v150_v46, %v146_v45  ;;  %v159_v52 = vld [vmem:[#allocation2 + $0x128] sm:$0xff]  ;;  %v129_v45 = vld [vmem:[#allocation2 + $0x38] sm:$0xff]  ;;  %v3824_v46 = vld [vmem:[#allocation5 + $0x3e4] ss:$16 sps:$4 sm:$0xff]  }
  0xa1   :  { %1033 = vmatpush1.bf16.msra.mxu0 %v3712_v53  ;;  %1259 = vmatpush1.bf16.msra.mxu1 %v3713_v54  ;;  %v3771_v53 = vld [vmem:[#allocation5 + $0x2c8] ss:$16 sps:$4 sm:$0xff]   ;;  %v3776_v54 = vld [vmem:[#allocation5 + $0x2e4] ss:$16 sps:$4 sm:$0xff]  }
  0xa2   :  { %1034 = vmatprep.subr.bf16.mxu0 %v3714_v55  ;;  %1260 = vmatprep.subr.bf16.mxu1 %v3716_v56  ;;  %v3779_v55 = vld [vmem:[#allocation5 + $0x2ec] ss:$16 sps:$4 sm:$0xff]   ;;  %v3774_v56 = vld [vmem:[#allocation5 + $0x2e0] ss:$16 sps:$4 sm:$0xff]  }
  0xa5   :  { %1035 = vmatpush1.bf16.msra.mxu0 %v3718_v57  ;;  %1261 = vmatpush1.bf16.msra.mxu1 %v3719_v58  ;;  %v3777_v57 = vld [vmem:[#allocation5 + $0x2e8] ss:$16 sps:$4 sm:$0xff]   ;;  %v203_v58 = vpack.c.bf16 %v159_v52, %v155_v51  ;;  %v124_v51 = vld [vmem:[#allocation2 + $0x10] sm:$0xff] }
  0xa6   :  { %1036 = vmatprep.subr.bf16.mxu0 %v3720_v59  ;;  %1262 = vmatprep.subr.bf16.mxu1 %v3722_v60  ;;  %v154_v59 = vld [vmem:[#allocation2 + $0x100] sm:$0xff]  ;;  %v128_v52 = vld [vmem:[#allocation2 + $0x30] sm:$0xff] }
  0xa7   :  { %v158_v60 = vld [vmem:[#allocation2 + $0x120] sm:$0xff] }
  0xa9   :  { %1037 = vmatpush1.bf16.msra.mxu0 %v3724_v61  ;;  %1263 = vmatpush1.bf16.msra.mxu1 %v3725_v62  ;;  %v3782_v61 = vld [vmem:[#allocation5 + $0x304] ss:$16 sps:$4 sm:$0xff]   ;;  %v3785_v62 = vld [vmem:[#allocation5 + $0x30c] ss:$16 sps:$4 sm:$0xff]  }
  0xaa   :  { %1038 = vmatprep.subr.bf16.mxu0 %v3726_v63  ;;  %1264 = vmatprep.subr.bf16.mxu1 %v3728_v0  ;;  %v202_v63 = vpack.c.bf16 %v158_v60, %v154_v59  ;;  %v163_v0 = vld [vmem:[#allocation2 + $0x148] sm:$0xff]  ;;  %v3833_v59 = vld [vmem:[#allocation7 + $0x14] ss:$8 sps:$4 sm:$0xff]  }
  0xab   :  { %v132_v60 = vld [vmem:[#allocation2 + $0x50] sm:$0xff] }
  0xad   :  { %1039 = vmatpush1.bf16.msra.mxu0 %v3730_v1  ;;  %1265 = vmatpush1.bf16.msra.mxu1 %v3731_v2  ;;  %v167_v1 = vld [vmem:[#allocation2 + $0x168] sm:$0xff]  ;;  %v3780_v2 = vld [vmem:[#allocation5 + $0x300] ss:$16 sps:$4 sm:$0xff]  }
  0xae   :  { %1121 = vmatprep.subr.bf16.mxu0 %v3734_v5  ;;  %1347 = vmatprep.subr.bf16.mxu1 %v3737_v6  ;;  %v3791_v5 = vld [vmem:[#allocation5 + $0x32c] ss:$16 sps:$4 sm:$0xff]   ;;  %v207_v6 = vpack.c.bf16 %v167_v1, %v163_v0  ;;  %v3831_v0 = vld [vmem:[#allocation7 + $0x10] ss:$8 sps:$4 sm:$0xff]  }
  0xaf   :  { %v3836_v1 = vld [vmem:[#allocation7 + $0x24] ss:$8 sps:$4 sm:$0xff]  }
  0xb0   :  { %1041 = vmatmul.mubr.bf16.vlgmr.msra.gmra.mrb[0].mxu0 %v186_v8  ;;  %1267 = vmatmul.mubr.bf16.vlgmr.msra.gmra.mrb[0].mxu1 %v186_v8  ;;  %v3789_v8 = vld [vmem:[#allocation5 + $0x328] ss:$16 sps:$4 sm:$0xff]  }
  0xb1   :  { %1122 = vmatpush1.bf16.msra.mxu0 %v3732_v7  ;;  %1348 = vmatpush1.bf16.msra.mxu1 %v3735_v9  ;;  %v3786_v7 = vld [vmem:[#allocation5 + $0x320] ss:$16 sps:$4 sm:$0xff]  }
  0xb2   :  { %1123 = vmatprep.subr.bf16.mxu0 %v3740_v12  ;;  %1349 = vmatprep.subr.bf16.mxu1 %v3743_v13  ;;  %v162_v9 = vld [vmem:[#allocation2 + $0x140] sm:$0xff]  ;;  %v3797_v12 = vld [vmem:[#allocation5 + $0x34c] ss:$16 sps:$4 sm:$0xff]  }
  0xb3   :  { %1050 = vmatprep.mubr.bf16.mxu0 %v191_v15  ;;  %1276 = vmatprep.mubr.bf16.mxu1 %v191_v15  ;;  %v206_v13 = vpack.c.bf16 %v166_v10, %v162_v9  ;;  %v175_v15 = vld [vmem:[#allocation2 + $0x1a8] sm:$0xff]  ;;  %v153_v9 = vld [vmem:[#allocation2 + $0xf8] sm:$0xff] }
  0xb4   :  { %v3837_v10 = vld [vmem:[#allocation7 + $0x30] ss:$8 sps:$4 sm:$0xff]  }
  0xb5   :  { %1124 = vmatpush1.bf16.msra.mxu0 %v3738_v14  ;;  %1350 = vmatpush1.bf16.msra.mxu1 %v3741_v16  ;;  %v171_v14 = vld [vmem:[#allocation2 + $0x188] sm:$0xff]  ;;  %v3792_v16 = vld [vmem:[#allocation5 + $0x340] ss:$16 sps:$4 sm:$0xff]  }
  0xb6   :  { %1125 = vmatprep.subr.bf16.mxu0 %v3746_v19  ;;  %1351 = vmatprep.subr.bf16.mxu1 %v3749_v20  ;;  %v3803_v19 = vld [vmem:[#allocation5 + $0x36c] ss:$16 sps:$4 sm:$0xff]   ;;  %v3798_v20 = vld [vmem:[#allocation5 + $0x360] ss:$16 sps:$4 sm:$0xff]  }
  0xb8   :  { %1051 = vmatmul.mubr.bf16.gmra.mrb[4].mxu0 %v190_v23  ;;  %1277 = vmatmul.mubr.bf16.gmra.mrb[4].mxu1 %v190_v23  ;;  %v170_v23 = vld [vmem:[#allocation2 + $0x180] sm:$0xff] }
  0xb9   :  { %1126 = vmatpush1.bf16.msra.mxu0 %v3744_v21  ;;  %1352 = vmatpush1.bf16.msra.mxu1 %v3747_v22  ;;  %v3801_v21 = vld [vmem:[#allocation5 + $0x368] ss:$16 sps:$4 sm:$0xff]   ;;  %v211_v22 = vpack.c.bf16 %v175_v15, %v171_v14  ;;  %v3845_v15 = vld [vmem:[#allocation7 + $0x54] ss:$8 sps:$4 sm:$0xff]  }
  0xba   :  { %1127 = vmatprep.subr.bf16.mxu0 %v3752_v26  ;;  %1353 = vmatprep.subr.bf16.mxu1 %v3755_v27  ;;  %v3809_v26 = vld [vmem:[#allocation5 + $0x38c] ss:$16 sps:$4 sm:$0xff]   ;;  %v3804_v27 = vld [vmem:[#allocation5 + $0x380] ss:$16 sps:$4 sm:$0xff]  }
  0xbb   :  { %1060 = vmatprep.mubr.bf16.mxu0 %v195_v28  ;;  %1286 = vmatprep.mubr.bf16.mxu1 %v195_v28  ;;  %v3807_v28 = vld [vmem:[#allocation5 + $0x388] ss:$16 sps:$4 sm:$0xff]  }
  0xbd   :  { %1128 = vmatpush1.bf16.msra.mxu0 %v3750_v29  ;;  %1354 = vmatpush1.bf16.msra.mxu1 %v3753_v30  ;;  %v210_v29 = vpack.c.bf16 %v174_v24, %v170_v23  ;;  %v179_v30 = vld [vmem:[#allocation2 + $0x1c8] sm:$0xff] }
  0xbe   :  { %1129 = vmatprep.subr.bf16.mxu0 %v3758_v33  ;;  %1355 = vmatprep.subr.bf16.mxu1 %v3761_v34  ;;  %v3815_v33 = vld [vmem:[#allocation5 + $0x3ac] ss:$16 sps:$4 sm:$0xff]   ;;  %v3810_v34 = vld [vmem:[#allocation5 + $0x3a0] ss:$16 sps:$4 sm:$0xff]  }
  0xbf   :  { %v3846_v23 = vld [vmem:[#allocation7 + $0x60] ss:$8 sps:$4 sm:$0xff]  }
  0xc0   :  { %1061 = vmatmul.mubr.bf16.gmra.mrb[8].mxu0 %v194_v37  ;;  %1287 = vmatmul.mubr.bf16.gmra.mrb[8].mxu1 %v194_v37  ;;  %v178_v37 = vld [vmem:[#allocation2 + $0x1c0] sm:$0xff] }
  0xc1   :  { %1130 = vmatpush1.bf16.msra.mxu0 %v3756_v35  ;;  %1356 = vmatpush1.bf16.msra.mxu1 %v3759_v36  ;;  %v3813_v35 = vld [vmem:[#allocation5 + $0x3a8] ss:$16 sps:$4 sm:$0xff]   ;;  %v215_v36 = vpack.c.bf16 %v183_v31, %v179_v30  ;;  %v3854_v31 = vld [vmem:[#allocation7 + $0x84] ss:$8 sps:$4 sm:$0xff]  }
  0xc2   :  { %1131 = vmatprep.subr.bf16.mxu0 %v3764_v40  ;;  %1357 = vmatprep.subr.bf16.mxu1 %v3767_v41  ;;  %v3821_v40 = vld [vmem:[#allocation5 + $0x3cc] ss:$16 sps:$4 sm:$0xff]   ;;  %v3816_v41 = vld [vmem:[#allocation5 + $0x3c0] ss:$16 sps:$4 sm:$0xff]  }
  0xc3   :  { %1070 = vmatprep.mubr.bf16.mxu0 %v199_v43  ;;  %1296 = vmatprep.mubr.bf16.mxu1 %v199_v43  ;;  %v214_v43 = vpack.c.bf16 %v182_v38, %v178_v37  ;;  %v3849_v30 = vld [vmem:[#allocation7 + $0x70] ss:$8 sps:$4 sm:$0xff]  }
  0xc4   :  { %v168_v37 = vld [vmem:[#allocation2 + $0x170] sm:$0xff]  ;;  %v173_v38 = vld [vmem:[#allocation2 + $0x198] sm:$0xff] }
  0xc5   :  { %1132 = vmatpush1.bf16.msra.mxu0 %v3762_v42  ;;  %1358 = vmatpush1.bf16.msra.mxu1 %v3765_v44  ;;  %v3819_v42 = vld [vmem:[#allocation5 + $0x3c8] ss:$16 sps:$4 sm:$0xff]  }
  0xc6   :  { %1133 = vmatprep.subr.bf16.mxu0 %v3770_v47  ;;  %1359 = vmatprep.subr.bf16.mxu1 %v3773_v48  ;;  %v125_v44 = vld [vmem:[#allocation2 + $0x18] sm:$0xff]  ;;  %v3822_v48 = vld [vmem:[#allocation5 + $0x3e0] ss:$16 sps:$4 sm:$0xff]  }
  0xc7   :  { %v3827_v47 = vld [vmem:[#allocation5 + $0x3ec] ss:$16 sps:$4 sm:$0xff]  }
  0xc8   :  { %1071 = vmatmul.mubr.bf16.gmra.mrb[12].mxu0 %v198_v50  ;;  %1297 = vmatmul.mubr.bf16.gmra.mrb[12].mxu1 %v198_v50  ;;  %v189_v50 = vpack.c.bf16 %v129_v45, %v125_v44  ;;  %v3858_v44 = vld [vmem:[#allocation7 + $0xa0] ss:$8 sps:$4 sm:$0xff]   ;;  %v3863_v45 = vld [vmem:[#allocation7 + $0xb4] ss:$8 sps:$4 sm:$0xff]  }
  0xc9   :  { %1134 = vmatpush1.bf16.msra.mxu0 %v3768_v49  ;;  %1360 = vmatpush1.bf16.msra.mxu1 %v3771_v53  ;;  %v3825_v49 = vld [vmem:[#allocation5 + $0x3e8] ss:$16 sps:$4 sm:$0xff]  }
  0xca   :  { %1135 = vmatprep.subr.bf16.mxu0 %v3776_v54  ;;  %1361 = vmatprep.subr.bf16.mxu1 %v3779_v55  ;;  %v133_v53 = vld [vmem:[#allocation2 + $0x58] sm:$0xff]  ;;  %v3830_v55 = vld [vmem:[#allocation7 + $0x4] ss:$8 sps:$4 sm:$0xff]  }
  0xcb   :  { %1080 = vmatprep.mubr.bf16.mxu0 %v203_v58  ;;  %1306 = vmatprep.mubr.bf16.mxu1 %v203_v58  ;;  %v137_v54 = vld [vmem:[#allocation2 + $0x78] sm:$0xff] }
  0xcc   :  { %v193_v58 = vpack.c.bf16 %v137_v54, %v133_v53  ;;  %v3864_v54 = vld [vmem:[#allocation7 + $0xc0] ss:$8 sps:$4 sm:$0xff]  }
  0xcd   :  { %1136 = vmatpush1.bf16.msra.mxu0 %v3774_v56  ;;  %1362 = vmatpush1.bf16.msra.mxu1 %v3777_v57  ;;  %v188_v56 = vpack.c.bf16 %v128_v52, %v124_v51  ;;  %v3828_v57 = vld [vmem:[#allocation7] ss:$8 sps:$4 sm:$0xff]   ;;  %v3866_v51 = vld [vmem:[#allocation7 + $0xc4] ss:$8 sps:$4 sm:$0xff]  }
  0xce   :  { %1137 = vmatprep.subr.bf16.mxu0 %v3782_v61  ;;  %1363 = vmatprep.subr.bf16.mxu1 %v3785_v62  ;;  %v136_v61 = vld [vmem:[#allocation2 + $0x70] sm:$0xff]  ;;  %v141_v62 = vld [vmem:[#allocation2 + $0x98] sm:$0xff] }
  0xd0   :  { %1081 = vmatmul.mubr.bf16.gmra.mrb[16].mxu0 %v202_v63  ;;  %1307 = vmatmul.mubr.bf16.gmra.mrb[16].mxu1 %v202_v63  ;;  %v145_v63 = vld [vmem:[#allocation2 + $0xb8] sm:$0xff] }
  0xd1   :  { %1138 = vmatpush1.bf16.msra.mxu0 %v3780_v2  ;;  %1364 = vmatpush1.bf16.msra.mxu1 %v3783_v3  ;;  %v192_v2 = vpack.c.bf16 %v136_v61, %v132_v60  ;;  %v3834_v3 = vld [vmem:[#allocation7 + $0x20] ss:$8 sps:$4 sm:$0xff]   ;;  %v3872_v60 = vld [vmem:[#allocation7 + $0xe4] ss:$8 sps:$4 sm:$0xff]  }
  0xd2   :  { %1139 = vmatprep.subr.bf16.mxu0 %v3788_v4  ;;  %1365 = vmatprep.subr.bf16.mxu1 %v3791_v5  ;;  %v197_v4 = vpack.c.bf16 %v145_v63, %v141_v62  ;;  %v3839_v5 = vld [vmem:[#allocation7 + $0x34] ss:$8 sps:$4 sm:$0xff]   ;;  %v3870_v61 = vld [vmem:[#allocation7 + $0xe0] ss:$8 sps:$4 sm:$0xff]   ;;  %v3873_v63 = vld [vmem:[#allocation7 + $0xf0] ss:$8 sps:$4 sm:$0xff]  }
  0xd3   :  { %1090 = vmatprep.mubr.bf16.mxu0 %v207_v6  ;;  %1316 = vmatprep.mubr.bf16.mxu1 %v207_v6  ;;  %v140_v6 = vld [vmem:[#allocation2 + $0x90] sm:$0xff] }
  0xd4   :  { %v3875_v62 = vld [vmem:[#allocation7 + $0xf4] ss:$8 sps:$4 sm:$0xff]  }
  0xd5   :  { %1140 = vmatpush1.bf16.msra.mxu0 %v3786_v7  ;;  %1366 = vmatpush1.bf16.msra.mxu1 %v3789_v8  ;;  %v144_v7 = vld [vmem:[#allocation2 + $0xb0] sm:$0xff]  ;;  %v149_v8 = vld [vmem:[#allocation2 + $0xd8] sm:$0xff] }
  0xd6   :  { %1141 = vmatprep.subr.bf16.mxu0 %v3794_v11  ;;  %1367 = vmatprep.subr.bf16.mxu1 %v3797_v12  ;;  %v3842_v11 = vld [vmem:[#allocation7 + $0x44] ss:$8 sps:$4 sm:$0xff]   ;;  %v196_v12 = vpack.c.bf16 %v144_v7, %v140_v6  ;;  %v201_v14 = vpack.c.bf16 %v153_v9, %v149_v8 }
  0xd8   :  { %1091 = vmatmul.mubr.bf16.gmra.mrb[20].mxu0 %v206_v13  ;;  %1317 = vmatmul.mubr.bf16.gmra.mrb[20].mxu1 %v206_v13  ;;  %v3840_v13 = vld [vmem:[#allocation7 + $0x40] ss:$8 sps:$4 sm:$0xff]  }
  0xd9   :  { %1142 = vmatpush1.bf16.msra.mxu0 %v3792_v16  ;;  %1368 = vmatpush1.bf16.msra.mxu1 %v3795_v17  ;;  %v148_v16 = vld [vmem:[#allocation2 + $0xd0] sm:$0xff] }
  0xda   :  { %1143 = vmatprep.subr.bf16.mxu0 %v3800_v18  ;;  %1369 = vmatprep.subr.bf16.mxu1 %v3803_v19  ;;  %v152_v17 = vld [vmem:[#allocation2 + $0xf0] sm:$0xff]  ;;  %v157_v18 = vld [vmem:[#allocation2 + $0x118] sm:$0xff] }
  0xdb   :  { %1100 = vmatprep.mubr.bf16.mxu0 %v211_v22  ;;  %1326 = vmatprep.mubr.bf16.mxu1 %v211_v22  ;;  %v161_v19 = vld [vmem:[#allocation2 + $0x138] sm:$0xff]  ;;  %v200_v22 = vpack.c.bf16 %v152_v17, %v148_v16 }
  0xdc   :  { %v205_v24 = vpack.c.bf16 %v161_v19, %v157_v18 }
  0xdd   :  { %1144 = vmatpush1.bf16.msra.mxu0 %v3798_v20  ;;  %1370 = vmatpush1.bf16.msra.mxu1 %v3801_v21  ;;  %v3843_v20 = vld [vmem:[#allocation7 + $0x50] ss:$8 sps:$4 sm:$0xff]   ;;  %v3848_v21 = vld [vmem:[#allocation7 + $0x64] ss:$8 sps:$4 sm:$0xff]  }
  0xde   :  { %1145 = vmatprep.subr.bf16.mxu0 %v3806_v25  ;;  %1371 = vmatprep.subr.bf16.mxu1 %v3809_v26  ;;  %v3851_v25 = vld [vmem:[#allocation7 + $0x74] ss:$8 sps:$4 sm:$0xff]  }
  0xdf   :  { %v156_v26 = vld [vmem:[#allocation2 + $0x110] sm:$0xff] }
  0xe0   :  { %1101 = vmatmul.mubr.bf16.gmra.mrb[24].mxu0 %v210_v29  ;;  %1327 = vmatmul.mubr.bf16.gmra.mrb[24].mxu1 %v210_v29  ;;  %v169_v29 = vld [vmem:[#allocation2 + $0x178] sm:$0xff] }
  0xe1   :  { %1146 = vmatpush1.bf16.msra.mxu0 %v3804_v27  ;;  %1372 = vmatpush1.bf16.msra.mxu1 %v3807_v28  ;;  %v160_v27 = vld [vmem:[#allocation2 + $0x130] sm:$0xff]  ;;  %v165_v28 = vld [vmem:[#allocation2 + $0x158] sm:$0xff] }
  0xe2   :  { %1147 = vmatprep.subr.bf16.mxu0 %v3812_v32  ;;  %1373 = vmatprep.subr.bf16.mxu1 %v3815_v33  ;;  %v204_v32 = vpack.c.bf16 %v160_v27, %v156_v26  ;;  %v3852_v33 = vld [vmem:[#allocation7 + $0x80] ss:$8 sps:$4 sm:$0xff]  }
  0xe3   :  { %1110 = vmatprep.mubr.bf16.mxu0 %v215_v36  ;;  %1336 = vmatprep.mubr.bf16.mxu1 %v215_v36  ;;  %v164_v36 = vld [vmem:[#allocation2 + $0x150] sm:$0xff]  ;;  %v3924_v26 = vld [vmem:[#allocation8] ss:$8 sps:$4 sm:$0xff]  }
  0xe5   :  { %1148 = vmatpush1.bf16.msra.mxu0 %v3810_v34  ;;  %1374 = vmatpush1.bf16.msra.mxu1 %v3813_v35  ;;  %v209_v34 = vpack.c.bf16 %v169_v29, %v165_v28  ;;  %v3857_v35 = vld [vmem:[#allocation7 + $0x94] ss:$8 sps:$4 sm:$0xff]   ;;  %v3926_v29 = vld [vmem:[#allocation8 + $0x4] ss:$8 sps:$4 sm:$0xff]  }
  0xe6   :  { %1149 = vmatprep.subr.bf16.mxu0 %v3818_v39  ;;  %1375 = vmatprep.subr.bf16.mxu1 %v3821_v40  ;;  %v177_v39 = vld [vmem:[#allocation2 + $0x1b8] sm:$0xff] }
  0xe7   :  { %v3855_v40 = vld [vmem:[#allocation7 + $0x90] ss:$8 sps:$4 sm:$0xff]  }
  0xe8   :  { %1111 = vmatmul.mubr.bf16.gmra.mrb[28].mxu0 %v214_v43  ;;  %1337 = vmatmul.mubr.bf16.gmra.mrb[28].mxu1 %v214_v43  ;;  %v213_v43 = vpack.c.bf16 %v177_v39, %v173_v38 }
  0xe9   :  { %1150 = vmatpush1.bf16.msra.mxu0 %v3816_v41  ;;  %1376 = vmatpush1.bf16.msra.mxu1 %v3819_v42  ;;  %v3860_v41 = vld [vmem:[#allocation7 + $0xa4] ss:$8 sps:$4 sm:$0xff]   ;;  %v208_v42 = vpack.c.bf16 %v168_v37, %v164_v36 }
  0xea   :  { %1151 = vmatprep.subr.bf16.mxu0 %v3824_v46  ;;  %1377 = vmatprep.subr.bf16.mxu1 %v3827_v47  ;;  %v172_v46 = vld [vmem:[#allocation2 + $0x190] sm:$0xff] }
  0xeb   :  { %1153 = vmatprep.mubr.bf16.mxu0 %v189_v50  ;;  %1379 = vmatprep.mubr.bf16.mxu1 %v189_v50  ;;  %v176_v47 = vld [vmem:[#allocation2 + $0x1b0] sm:$0xff] }
  0xec   :  { %v3861_v50 = vld [vmem:[#allocation7 + $0xb0] ss:$8 sps:$4 sm:$0xff]   ;;  %v212_v52 = vpack.c.bf16 %v176_v47, %v172_v46  ;;  %v3876_v46 = vld [vmem:[#allocation7 + $0x100] ss:$8 sps:$4 sm:$0xff]   ;;  %v3932_v47 = vld [vmem:[#allocation8 + $0x24] ss:$8 sps:$4 sm:$0xff]  }
  0xed   :  { %1152 = vmatpush1.bf16.msra.mxu0 %v3822_v48  ;;  %1378 = vmatpush1.bf16.msra.mxu1 %v3825_v49  ;;  %v181_v48 = vld [vmem:[#allocation2 + $0x1d8] sm:$0xff] }
  0xee   :  { %1952 = vmatprep.subr.bf16.mxu0 %v3830_v55  ;;  %v185_v49 = vld [vmem:[#allocation2 + $0x1f8] sm:$0xff]  ;;  %2430 = vmatprep.subr.bf16.mxu1 %v3926_v29 }
  0xef   :  { %v217_v53 = vpack.c.bf16 %v185_v49, %v181_v48  ;;  %v3869_v55 = vld [vmem:[#allocation7 + $0xd4] ss:$8 sps:$4 sm:$0xff]  }
  0xf0   :  { %1154 = vmatmul.mubr.bf16.vlgmr.msra.gmra.mrb[0].mxu0 %v188_v56  ;;  %1380 = vmatmul.mubr.bf16.vlgmr.msra.gmra.mrb[0].mxu1 %v188_v56  ;;  %v180_v56 = vld [vmem:[#allocation2 + $0x1d0] sm:$0xff] }
  0xf1   :  { %1163 = vmatprep.mubr.bf16.mxu0 %v193_v58  ;;  %1389 = vmatprep.mubr.bf16.mxu1 %v193_v58  ;;  %v3867_v58 = vld [vmem:[#allocation7 + $0xd0] ss:$8 sps:$4 sm:$0xff]  }
  0xf2   :  { %1953 = vmatpush1.bf16.msra.mxu0 %v3828_v57  ;;  %v184_v57 = vld [vmem:[#allocation2 + $0x1f0] sm:$0xff]  ;;  %2431 = vmatpush1.bf16.msra.mxu1 %v3924_v26 }
  0xf3   :  { %1954 = vmatprep.subr.bf16.mxu0 %v3833_v59  ;;  %v216_v59 = vpack.c.bf16 %v184_v57, %v180_v56 }
  0xf6   :  { %1955 = vmatpush1.bf16.msra.mxu0 %v3831_v0  ;;  %v3878_v0 = vld [vmem:[#allocation7 + $0x104] ss:$8 sps:$4 sm:$0xff]  }
  0xf7   :  { %1956 = vmatprep.subr.bf16.mxu0 %v3836_v1  ;;  %v348_v1 = vlaneseq }
  0xf8   :  { %1164 = vmatmul.mubr.bf16.gmra.mrb[4].mxu0 %v192_v2  ;;  %1390 = vmatmul.mubr.bf16.gmra.mrb[4].mxu1 %v192_v2 }
  0xf9   :  { %1173 = vmatprep.mubr.bf16.mxu0 %v197_v4  ;;  %1399 = vmatprep.mubr.bf16.mxu1 %v197_v4  ;;  %v349_v2 = vshrl.u32 %v348_v1, 7  ;;  %v3935_v1 = vld [vmem:[#allocation8 + $0x34] ss:$8 sps:$4 sm:$0xff]  }
  0xfa   :  { %1957 = vmatpush1.bf16.msra.mxu0 %v3834_v3 }
  0xfb   :  { %1958 = vmatprep.subr.bf16.mxu0 %v3839_v5  ;;  %v4313_v3 = vsub.s32 0, %v349_v2  ;;  %v358_v4 = vsub.s32 2, %v349_v2  ;;  %v346_v5 = vld [vmem:[%s4556_s2] sm:$0xf]  ;;  %v4318_v6 = vsub.s32 1, %v349_v2  ;;  %v362_v7 = vsub.s32 3, %v349_v2 }
  0xfd   :  { %v4321_v8 = vrot.slane %v346_v5, %v4313_v3  ;;  %v4323_v9 = vrot.slane %v346_v5, %v358_v4 }
  0xfe   :  { %1959 = vmatpush1.bf16.msra.mxu0 %v3837_v10  ;;  %v4326_v10 = vrot.slane %v346_v5, %v4318_v6 }
  0xff   :  { %1960 = vmatprep.subr.bf16.mxu0 %v3842_v11  ;;  %v4328_v11 = vrot.slane %v346_v5, %v362_v7 }
 0x100   :  { %1174 = vmatmul.mubr.bf16.gmra.mrb[8].mxu0 %v196_v12  ;;  %1400 = vmatmul.mubr.bf16.gmra.mrb[8].mxu1 %v196_v12 }
 0x101   :  { %1183 = vmatprep.mubr.bf16.mxu0 %v201_v14  ;;  %1409 = vmatprep.mubr.bf16.mxu1 %v201_v14 }
 0x102   :  { %1961 = vmatpush1.bf16.msra.mxu0 %v3840_v13 }
 0x103   :  { %1962 = vmatprep.subr.bf16.mxu0 %v3845_v15 }
 0x106   :  { %1963 = vmatpush1.bf16.msra.mxu0 %v3843_v20 }
 0x107   :  { %1964 = vmatprep.subr.bf16.mxu0 %v3848_v21 }
 0x108   :  { %1184 = vmatmul.mubr.bf16.gmra.mrb[12].mxu0 %v200_v22  ;;  %1410 = vmatmul.mubr.bf16.gmra.mrb[12].mxu1 %v200_v22 }
 0x109   :  { %1193 = vmatprep.mubr.bf16.mxu0 %v205_v24  ;;  %1419 = vmatprep.mubr.bf16.mxu1 %v205_v24 }
 0x10a   :  { %1965 = vmatpush1.bf16.msra.mxu0 %v3846_v23 }
 0x10b   :  { %1966 = vmatprep.subr.bf16.mxu0 %v3851_v25 }
 0x10e   :  { %1967 = vmatpush1.bf16.msra.mxu0 %v3849_v30 }
 0x10f   :  { %1968 = vmatprep.subr.bf16.mxu0 %v3854_v31 }
 0x110   :  { %1194 = vmatmul.mubr.bf16.gmra.mrb[16].mxu0 %v204_v32  ;;  %1420 = vmatmul.mubr.bf16.gmra.mrb[16].mxu1 %v204_v32 }
 0x111   :  { %1203 = vmatprep.mubr.bf16.mxu0 %v209_v34  ;;  %1429 = vmatprep.mubr.bf16.mxu1 %v209_v34  ;;  %v3929_v34 = vld [vmem:[#allocation8 + $0x14] ss:$8 sps:$4 sm:$0xff]  }
 0x112   :  { %1969 = vmatpush1.bf16.msra.mxu0 %v3852_v33  ;;  %2432 = vmatprep.subr.bf16.mxu1 %v3929_v34 }
 0x113   :  { %1970 = vmatprep.subr.bf16.mxu0 %v3857_v35 }
 0x116   :  { %1971 = vmatpush1.bf16.msra.mxu0 %v3855_v40 }
 0x117   :  { %1972 = vmatprep.subr.bf16.mxu0 %v3860_v41  ;;  %v3927_v41 = vld [vmem:[#allocation8 + $0x10] ss:$8 sps:$4 sm:$0xff]  }
 0x118   :  { %1204 = vmatmul.mubr.bf16.gmra.mrb[20].mxu0 %v208_v42  ;;  %1430 = vmatmul.mubr.bf16.gmra.mrb[20].mxu1 %v208_v42 }
 0x119   :  { %1213 = vmatprep.mubr.bf16.mxu0 %v213_v43  ;;  %1439 = vmatprep.mubr.bf16.mxu1 %v213_v43 }
 0x11a   :  { %1973 = vmatpush1.bf16.msra.mxu0 %v3858_v44  ;;  %2433 = vmatpush1.bf16.msra.mxu1 %v3927_v41 }
 0x11b   :  { %1974 = vmatprep.subr.bf16.mxu0 %v3863_v45  ;;  %2434 = vmatprep.subr.bf16.mxu1 %v3932_v47 }
 0x11e   :  { %1975 = vmatpush1.bf16.msra.mxu0 %v3861_v50 }
 0x11f   :  { %1976 = vmatprep.subr.bf16.mxu0 %v3866_v51 }
 0x120   :  { %1214 = vmatmul.mubr.bf16.gmra.mrb[24].mxu0 %v212_v52  ;;  %1440 = vmatmul.mubr.bf16.gmra.mrb[24].mxu1 %v212_v52  ;;  %v3881_v52 = vld [vmem:[#allocation7 + $0x114] ss:$8 sps:$4 sm:$0xff]  }
 0x121   :  { %1223 = vmatprep.mubr.bf16.mxu0 %v217_v53  ;;  %1449 = vmatprep.mubr.bf16.mxu1 %v217_v53 }
 0x122   :  { %1977 = vmatpush1.bf16.msra.mxu0 %v3864_v54 }
 0x123   :  { %1978 = vmatprep.subr.bf16.mxu0 %v3869_v55 }
 0x126   :  { %1979 = vmatpush1.bf16.msra.mxu0 %v3867_v58 }
 0x127   :  { %1980 = vmatprep.subr.bf16.mxu0 %v3872_v60 }
 0x128   :  { %1224 = vmatmul.mubr.bf16.gmra.mrb[28].mxu0 %v216_v59  ;;  %1450 = vmatmul.mubr.bf16.gmra.mrb[28].mxu1 %v216_v59 }
 0x12a   :  { %1981 = vmatpush1.bf16.msra.mxu0 %v3870_v61  ;;  %v3930_v61 = vld [vmem:[#allocation8 + $0x20] ss:$8 sps:$4 sm:$0xff]  }
 0x12b   :  { %1982 = vmatprep.subr.bf16.mxu0 %v3875_v62  ;;  %2435 = vmatpush1.bf16.msra.mxu1 %v3930_v61 }
 0x12c   :  { %2436 = vmatprep.subr.bf16.mxu1 %v3935_v1 }
 0x12e   :  { %1983 = vmatpush1.bf16.msra.mxu0 %v3873_v63 }
 0x12f   :  { %2065 = vmatprep.subr.bf16.mxu0 %v3878_v0  ;;  %v3879_v0 = vld [vmem:[#allocation7 + $0x110] ss:$8 sps:$4 sm:$0xff]  }
 0x1c3   :  { %v1155_v12 = vpop.f32.mrb[0].mxu0  ;;  %v1381_v13 = vpop.f32.mrb[0].mxu1 }
 0x1c4   :  { %v3429_v14 = vadd.f32 %v1155_v12, %v4321_v8  ;;  %v3461_v15 = vadd.f32 %v1381_v13, %v4323_v9  ;;  %v1157_v16 = vpop.f32.mrb[1].mxu0  ;;  %v1383_v17 = vpop.f32.mrb[1].mxu1  ;;  %v3884_v12 = vld [vmem:[#allocation7 + $0x124] ss:$8 sps:$4 sm:$0xff]  }
 0x1c5   :  { %v3430_v18 = vadd.f32 %v1157_v16, %v4326_v10  ;;  %v3462_v19 = vadd.f32 %v1383_v17, %v4328_v11  ;;  %v1159_v20 = vpop.f32.mrb[2].mxu0  ;;  %v1385_v21 = vpop.f32.mrb[2].mxu1 }
 0x1c6   :  { %v3431_v22 = vadd.f32 %v1159_v20, %v4321_v8  ;;  %v3463_v23 = vadd.f32 %v1385_v21, %v4323_v9  ;;  %v1161_v24 = vpop.f32.mrb[3].mxu0  ;;  %v1387_v25 = vpop.f32.mrb[3].mxu1  ;;  %v1460_v30 = vmax.f32 %v3429_v14, 0.0  ;;  %v1462_v31 = vmax.f32 %v3461_v15, 0.0 }
 0x1c7   :  { %v3432_v27 = vadd.f32 %v1161_v24, %v4326_v10  ;;  %v3464_v28 = vadd.f32 %v1387_v25, %v4328_v11  ;;  %v1461_v35 = vmax.f32 %v3430_v18, 0.0  ;;  %v1463_v36 = vmax.f32 %v3462_v19, 0.0  ;;  %v3933_v19 = vld [vmem:[#allocation8 + $0x30] ss:$8 sps:$4 sm:$0xff]   ;;  %v3882_v24 = vld [vmem:[#allocation7 + $0x120] ss:$8 sps:$4 sm:$0xff]  }
 0x1c8   :  { %v1464_v32 = vmax.f32 %v3431_v22, 0.0  ;;  %v1466_v33 = vmax.f32 %v3463_v23, 0.0  ;;  %v3938_v25 = vld [vmem:[#allocation8 + $0x44] ss:$8 sps:$4 sm:$0xff]   ;;  %2437 = vmatpush1.bf16.msra.mxu1 %v3933_v19 }
 0x1c9   :  { %v1465_v37 = vmax.f32 %v3432_v27, 0.0  ;;  %v1467_v38 = vmax.f32 %v3464_v28, 0.0  ;;  %2438 = vmatprep.subr.bf16.mxu1 %v3938_v25  ;;  %v3947_v25 = vld [vmem:[#allocation8 + $0x74] ss:$8 sps:$4 sm:$0xff]  }
 0x1ca   :  { %v1524_v39 = vpack.c.bf16 %v1464_v32, %v1460_v30  ;;  %v4338_v40 = vpack.c.bf16 %v1466_v33, %v1462_v31  ;;  %v3887_v30 = vld [vmem:[#allocation7 + $0x134] ss:$8 sps:$4 sm:$0xff]  }
 0x1cb   :  { %v1525_v42 = vpack.c.bf16 %v1465_v37, %v1461_v35  ;;  %v4340_v43 = vpack.c.bf16 %v1467_v38, %v1463_v36  ;;  %v1165_v44 = vpop.f32.mrb[4].mxu0  ;;  %v1391_v45 = vpop.f32.mrb[4].mxu1 }
 0x1cc   :  { %v3433_v48 = vadd.f32 %v1165_v44, %v4321_v8  ;;  %v3465_v49 = vadd.f32 %v1391_v45, %v4323_v9  ;;  %v1167_v50 = vpop.f32.mrb[5].mxu0  ;;  %v1393_v51 = vpop.f32.mrb[5].mxu1  ;;  %v3885_v44 = vld [vmem:[#allocation7 + $0x130] ss:$8 sps:$4 sm:$0xff]   ;;  %v3941_v45 = vld [vmem:[#allocation8 + $0x54] ss:$8 sps:$4 sm:$0xff]  }
 0x1cd   :  { %v3434_v53 = vadd.f32 %v1167_v50, %v4326_v10  ;;  %v3466_v54 = vadd.f32 %v1393_v51, %v4328_v11  ;;  %v1169_v55 = vpop.f32.mrb[6].mxu0  ;;  %v1395_v56 = vpop.f32.mrb[6].mxu1  ;;  %1984 = vmatprep.mubr.bf16.mxu0 %v1525_v42  ;;  %v3890_v50 = vld [vmem:[#allocation7 + $0x144] ss:$8 sps:$4 sm:$0xff]  }
 0x1ce   :  { %v3435_v57 = vadd.f32 %v1169_v55, %v4321_v8  ;;  %v3467_v58 = vadd.f32 %v1395_v56, %v4323_v9  ;;  %v1171_v59 = vpop.f32.mrb[7].mxu0  ;;  %v1397_v60 = vpop.f32.mrb[7].mxu1  ;;  %1985 = vmatmul.mubr.bf16.vlgmr.msra.gmra.mrb[32].mxu0 %v1524_v39  ;;  %v1468_v2 = vmax.f32 %v3433_v48, 0.0  ;;  %v1470_v4 = vmax.f32 %v3465_v49, 0.0  ;;  %v3936_v39 = vld [vmem:[#allocation8 + $0x40] ss:$8 sps:$4 sm:$0xff]  }
 0x1cf   :  { %v3436_v62 = vadd.f32 %v1171_v59, %v4326_v10  ;;  %v3468_v63 = vadd.f32 %v1397_v60, %v4328_v11  ;;  %2066 = vmatpush1.bf16.msra.mxu0 %v3876_v46  ;;  %v1469_v13 = vmax.f32 %v3434_v53, 0.0  ;;  %v1471_v14 = vmax.f32 %v3466_v54, 0.0  ;;  %2439 = vmatpush1.bf16.msra.mxu1 %v3936_v39 }
 0x1d0   :  { %v1472_v5 = vmax.f32 %v3435_v57, 0.0  ;;  %v1474_v7 = vmax.f32 %v3467_v58, 0.0  ;;  %2067 = vmatprep.subr.bf16.mxu0 %v3881_v52  ;;  %v3939_v57 = vld [vmem:[#allocation8 + $0x50] ss:$8 sps:$4 sm:$0xff]   ;;  %2440 = vmatprep.subr.bf16.mxu1 %v3941_v45  ;;  %v3950_v45 = vld [vmem:[#allocation8 + $0x84] ss:$8 sps:$4 sm:$0xff]  }
 0x1d1   :  { %v1473_v15 = vmax.f32 %v3436_v62, 0.0  ;;  %v1475_v16 = vmax.f32 %v3468_v63, 0.0  ;;  %v3888_v62 = vld [vmem:[#allocation7 + $0x140] ss:$8 sps:$4 sm:$0xff]   ;;  %v3944_v63 = vld [vmem:[#allocation8 + $0x64] ss:$8 sps:$4 sm:$0xff]  }
 0x1d2   :  { %v1528_v17 = vpack.c.bf16 %v1472_v5, %v1468_v2  ;;  %v4350_v18 = vpack.c.bf16 %v1474_v7, %v1470_v4  ;;  %v3893_v5 = vld [vmem:[#allocation7 + $0x154] ss:$8 sps:$4 sm:$0xff]  }
 0x1d3   :  { %v1529_v20 = vpack.c.bf16 %v1473_v15, %v1469_v13  ;;  %v4352_v21 = vpack.c.bf16 %v1475_v16, %v1471_v14  ;;  %v1175_v22 = vpop.f32.mrb[8].mxu0  ;;  %v1401_v23 = vpop.f32.mrb[8].mxu1  ;;  %2068 = vmatpush1.bf16.msra.mxu0 %v3879_v0  ;;  %2441 = vmatpush1.bf16.msra.mxu1 %v3939_v57 }
 0x1d4   :  { %v3437_v26 = vadd.f32 %v1175_v22, %v4321_v8  ;;  %v3469_v27 = vadd.f32 %v1401_v23, %v4323_v9  ;;  %v1177_v28 = vpop.f32.mrb[9].mxu0  ;;  %v1403_v29 = vpop.f32.mrb[9].mxu1  ;;  %2069 = vmatprep.subr.bf16.mxu0 %v3884_v12  ;;  %2442 = vmatprep.subr.bf16.mxu1 %v3944_v63 }
 0x1d5   :  { %v3438_v31 = vadd.f32 %v1177_v28, %v4326_v10  ;;  %v3470_v32 = vadd.f32 %v1403_v29, %v4328_v11  ;;  %v1179_v33 = vpop.f32.mrb[10].mxu0  ;;  %v1405_v34 = vpop.f32.mrb[10].mxu1  ;;  %1994 = vmatprep.mubr.bf16.mxu0 %v1529_v20  ;;  %v3942_v20 = vld [vmem:[#allocation8 + $0x60] ss:$8 sps:$4 sm:$0xff]  }
 0x1d6   :  { %v3439_v35 = vadd.f32 %v1179_v33, %v4321_v8  ;;  %v3471_v36 = vadd.f32 %v1405_v34, %v4323_v9  ;;  %v1181_v37 = vpop.f32.mrb[11].mxu0  ;;  %v1407_v38 = vpop.f32.mrb[11].mxu1  ;;  %1995 = vmatmul.mubr.bf16.gmra.mrb[36].mxu0 %v1528_v17  ;;  %v1476_v46 = vmax.f32 %v3437_v26, 0.0  ;;  %v1478_v47 = vmax.f32 %v3469_v27, 0.0 }
 0x1d7   :  { %v3440_v41 = vadd.f32 %v1181_v37, %v4326_v10  ;;  %v3472_v42 = vadd.f32 %v1407_v38, %v4328_v11  ;;  %2070 = vmatpush1.bf16.msra.mxu0 %v3882_v24  ;;  %v1477_v51 = vmax.f32 %v3438_v31, 0.0  ;;  %v1479_v52 = vmax.f32 %v3470_v32, 0.0  ;;  %v3891_v24 = vld [vmem:[#allocation7 + $0x150] ss:$8 sps:$4 sm:$0xff]   ;;  %2443 = vmatpush1.bf16.msra.mxu1 %v3942_v20 }
 0x1d8   :  { %v1480_v48 = vmax.f32 %v3439_v35, 0.0  ;;  %v1482_v49 = vmax.f32 %v3471_v36, 0.0  ;;  %2071 = vmatprep.subr.bf16.mxu0 %v3887_v30  ;;  %v3896_v30 = vld [vmem:[#allocation7 + $0x164] ss:$8 sps:$4 sm:$0xff]   ;;  %v3945_v37 = vld [vmem:[#allocation8 + $0x70] ss:$8 sps:$4 sm:$0xff]   ;;  %2444 = vmatprep.subr.bf16.mxu1 %v3947_v25 }
 0x1d9   :  { %v1481_v53 = vmax.f32 %v3440_v41, 0.0  ;;  %v1483_v54 = vmax.f32 %v3472_v42, 0.0  ;;  %v3951_v20 = vld [vmem:[#allocation8 + $0x90] ss:$8 sps:$4 sm:$0xff]  }
 0x1da   :  { %v1532_v55 = vpack.c.bf16 %v1480_v48, %v1476_v46  ;;  %v4362_v56 = vpack.c.bf16 %v1482_v49, %v1478_v47 }
 0x1db   :  { %v1533_v58 = vpack.c.bf16 %v1481_v53, %v1477_v51  ;;  %v4364_v59 = vpack.c.bf16 %v1483_v54, %v1479_v52  ;;  %v1185_v60 = vpop.f32.mrb[12].mxu0  ;;  %v1411_v61 = vpop.f32.mrb[12].mxu1  ;;  %2072 = vmatpush1.bf16.msra.mxu0 %v3885_v44  ;;  %v3894_v44 = vld [vmem:[#allocation7 + $0x160] ss:$8 sps:$4 sm:$0xff]   ;;  %2445 = vmatpush1.bf16.msra.mxu1 %v3945_v37 }
 0x1dc   :  { %v3441_v0 = vadd.f32 %v1185_v60, %v4321_v8  ;;  %v3473_v1 = vadd.f32 %v1411_v61, %v4323_v9  ;;  %v1187_v2 = vpop.f32.mrb[13].mxu0  ;;  %v1413_v4 = vpop.f32.mrb[13].mxu1  ;;  %2073 = vmatprep.subr.bf16.mxu0 %v3890_v50  ;;  %v3899_v50 = vld [vmem:[#allocation7 + $0x174] ss:$8 sps:$4 sm:$0xff]   ;;  %v3948_v61 = vld [vmem:[#allocation8 + $0x80] ss:$8 sps:$4 sm:$0xff]   ;;  %2446 = vmatprep.subr.bf16.mxu1 %v3950_v45 }
 0x1dd   :  { %v3442_v7 = vadd.f32 %v1187_v2, %v4326_v10  ;;  %v3474_v12 = vadd.f32 %v1413_v4, %v4328_v11  ;;  %v1189_v13 = vpop.f32.mrb[14].mxu0  ;;  %v1415_v14 = vpop.f32.mrb[14].mxu1  ;;  %2004 = vmatprep.mubr.bf16.mxu0 %v1533_v58  ;;  %v3954_v45 = vld [vmem:[#allocation8 + $0xa0] ss:$8 sps:$4 sm:$0xff]  }
 0x1de   :  { %v3443_v15 = vadd.f32 %v1189_v13, %v4321_v8  ;;  %v3475_v16 = vadd.f32 %v1415_v14, %v4323_v9  ;;  %v1191_v17 = vpop.f32.mrb[15].mxu0  ;;  %v1417_v19 = vpop.f32.mrb[15].mxu1  ;;  %2005 = vmatmul.mubr.bf16.gmra.mrb[40].mxu0 %v1532_v55  ;;  %v1484_v26 = vmax.f32 %v3441_v0, 0.0  ;;  %v1486_v27 = vmax.f32 %v3473_v1, 0.0  ;;  %v3897_v0 = vld [vmem:[#allocation7 + $0x170] ss:$8 sps:$4 sm:$0xff]  }
 0x1df   :  { %v3444_v22 = vadd.f32 %v1191_v17, %v4326_v10  ;;  %v3476_v23 = vadd.f32 %v1417_v19, %v4328_v11  ;;  %2074 = vmatpush1.bf16.msra.mxu0 %v3888_v62  ;;  %v1485_v31 = vmax.f32 %v3442_v7, 0.0  ;;  %v1487_v32 = vmax.f32 %v3474_v12, 0.0  ;;  %v3953_v1 = vld [vmem:[#allocation8 + $0x94] ss:$8 sps:$4 sm:$0xff]   ;;  %v3902_v12 = vld [vmem:[#allocation7 + $0x184] ss:$8 sps:$4 sm:$0xff]   ;;  %2447 = vmatpush1.bf16.msra.mxu1 %v3948_v61 }
 0x1e0   :  { %v1488_v28 = vmax.f32 %v3443_v15, 0.0  ;;  %v1490_v29 = vmax.f32 %v3475_v16, 0.0  ;;  %2075 = vmatprep.subr.bf16.mxu0 %v3893_v5  ;;  %2448 = vmatprep.subr.bf16.mxu1 %v3953_v1 }
 0x1e1   :  { %v1489_v33 = vmax.f32 %v3444_v22, 0.0  ;;  %v1491_v34 = vmax.f32 %v3476_v23, 0.0 }
 0x1e2   :  { %v1536_v35 = vpack.c.bf16 %v1488_v28, %v1484_v26  ;;  %v4374_v36 = vpack.c.bf16 %v1490_v29, %v1486_v27  ;;  %v3900_v26 = vld [vmem:[#allocation7 + $0x180] ss:$8 sps:$4 sm:$0xff]   ;;  %v3956_v27 = vld [vmem:[#allocation8 + $0xa4] ss:$8 sps:$4 sm:$0xff]  }
 0x1e3   :  { %v1537_v38 = vpack.c.bf16 %v1489_v33, %v1485_v31  ;;  %v4376_v39 = vpack.c.bf16 %v1491_v34, %v1487_v32  ;;  %v1195_v41 = vpop.f32.mrb[16].mxu0  ;;  %v1421_v42 = vpop.f32.mrb[16].mxu1  ;;  %2076 = vmatpush1.bf16.msra.mxu0 %v3891_v24  ;;  %v3905_v32 = vld [vmem:[#allocation7 + $0x194] ss:$8 sps:$4 sm:$0xff]   ;;  %2449 = vmatpush1.bf16.msra.mxu1 %v3951_v20 }
 0x1e4   :  { %v3445_v46 = vadd.f32 %v1195_v41, %v4321_v8  ;;  %v3477_v47 = vadd.f32 %v1421_v42, %v4323_v9  ;;  %v1197_v48 = vpop.f32.mrb[17].mxu0  ;;  %v1423_v49 = vpop.f32.mrb[17].mxu1  ;;  %2077 = vmatprep.subr.bf16.mxu0 %v3896_v30  ;;  %2450 = vmatprep.subr.bf16.mxu1 %v3956_v27 }
 0x1e5   :  { %v3446_v51 = vadd.f32 %v1197_v48, %v4326_v10  ;;  %v3478_v52 = vadd.f32 %v1423_v49, %v4328_v11  ;;  %v1199_v53 = vpop.f32.mrb[18].mxu0  ;;  %v1425_v54 = vpop.f32.mrb[18].mxu1  ;;  %2014 = vmatprep.mubr.bf16.mxu0 %v1537_v38  ;;  %v3903_v48 = vld [vmem:[#allocation7 + $0x190] ss:$8 sps:$4 sm:$0xff]   ;;  %v3959_v49 = vld [vmem:[#allocation8 + $0xb4] ss:$8 sps:$4 sm:$0xff]  }
 0x1e6   :  { %v3447_v55 = vadd.f32 %v1199_v53, %v4321_v8  ;;  %v3479_v57 = vadd.f32 %v1425_v54, %v4323_v9  ;;  %v1201_v58 = vpop.f32.mrb[19].mxu0  ;;  %v1427_v60 = vpop.f32.mrb[19].mxu1  ;;  %2015 = vmatmul.mubr.bf16.gmra.mrb[44].mxu0 %v1536_v35  ;;  %v1492_v2 = vmax.f32 %v3445_v46, 0.0  ;;  %v1494_v4 = vmax.f32 %v3477_v47, 0.0  ;;  %v3908_v54 = vld [vmem:[#allocation7 + $0x1a4] ss:$8 sps:$4 sm:$0xff]  }
 0x1e7   :  { %v3448_v62 = vadd.f32 %v1201_v58, %v4326_v10  ;;  %v3480_v63 = vadd.f32 %v1427_v60, %v4328_v11  ;;  %2078 = vmatpush1.bf16.msra.mxu0 %v3894_v44  ;;  %v1493_v13 = vmax.f32 %v3446_v51, 0.0  ;;  %v1495_v14 = vmax.f32 %v3478_v52, 0.0  ;;  %2451 = vmatpush1.bf16.msra.mxu1 %v3954_v45 }
 0x1e8   :  { %v1496_v5 = vmax.f32 %v3447_v55, 0.0  ;;  %v1498_v7 = vmax.f32 %v3479_v57, 0.0  ;;  %2079 = vmatprep.subr.bf16.mxu0 %v3899_v50  ;;  %2452 = vmatprep.subr.bf16.mxu1 %v3959_v49  ;;  %v3963_v49 = vld [vmem:[#allocation8 + $0xd0] ss:$8 sps:$4 sm:$0xff]  }
 0x1e9   :  { %v1497_v15 = vmax.f32 %v3448_v62, 0.0  ;;  %v1499_v16 = vmax.f32 %v3480_v63, 0.0  ;;  %v3957_v63 = vld [vmem:[#allocation8 + $0xb0] ss:$8 sps:$4 sm:$0xff]  }
 0x1ea   :  { %v1540_v17 = vpack.c.bf16 %v1496_v5, %v1492_v2  ;;  %v4386_v19 = vpack.c.bf16 %v1498_v7, %v1494_v4  ;;  %v3906_v5 = vld [vmem:[#allocation7 + $0x1a0] ss:$8 sps:$4 sm:$0xff]   ;;  %v3962_v7 = vld [vmem:[#allocation8 + $0xc4] ss:$8 sps:$4 sm:$0xff]  }
 0x1eb   :  { %v1541_v22 = vpack.c.bf16 %v1497_v15, %v1493_v13  ;;  %v4388_v23 = vpack.c.bf16 %v1499_v16, %v1495_v14  ;;  %v1205_v24 = vpop.f32.mrb[20].mxu0  ;;  %v1431_v25 = vpop.f32.mrb[20].mxu1  ;;  %2080 = vmatpush1.bf16.msra.mxu0 %v3897_v0  ;;  %v3911_v16 = vld [vmem:[#allocation7 + $0x1b4] ss:$8 sps:$4 sm:$0xff]   ;;  %2453 = vmatpush1.bf16.msra.mxu1 %v3957_v63 }
 0x1ec   :  { %v3449_v28 = vadd.f32 %v1205_v24, %v4321_v8  ;;  %v3481_v29 = vadd.f32 %v1431_v25, %v4323_v9  ;;  %v1207_v30 = vpop.f32.mrb[21].mxu0  ;;  %v1433_v31 = vpop.f32.mrb[21].mxu1  ;;  %2081 = vmatprep.subr.bf16.mxu0 %v3902_v12  ;;  %2454 = vmatprep.subr.bf16.mxu1 %v3962_v7 }
 0x1ed   :  { %v3450_v33 = vadd.f32 %v1207_v30, %v4326_v10  ;;  %v3482_v34 = vadd.f32 %v1433_v31, %v4328_v11  ;;  %v1209_v35 = vpop.f32.mrb[22].mxu0  ;;  %v1435_v37 = vpop.f32.mrb[22].mxu1  ;;  %2024 = vmatprep.mubr.bf16.mxu0 %v1541_v22 }
 0x1ee   :  { %v3451_v38 = vadd.f32 %v1209_v35, %v4321_v8  ;;  %v3483_v41 = vadd.f32 %v1435_v37, %v4323_v9  ;;  %v1211_v42 = vpop.f32.mrb[23].mxu0  ;;  %v1437_v44 = vpop.f32.mrb[23].mxu1  ;;  %2025 = vmatmul.mubr.bf16.gmra.mrb[48].mxu0 %v1540_v17  ;;  %v1500_v50 = vmax.f32 %v3449_v28, 0.0  ;;  %v1502_v51 = vmax.f32 %v3481_v29, 0.0  ;;  %v3960_v29 = vld [vmem:[#allocation8 + $0xc0] ss:$8 sps:$4 sm:$0xff]  }
 0x1ef   :  { %v3452_v46 = vadd.f32 %v1211_v42, %v4326_v10  ;;  %v3484_v47 = vadd.f32 %v1437_v44, %v4328_v11  ;;  %2082 = vmatpush1.bf16.msra.mxu0 %v3900_v26  ;;  %v1501_v55 = vmax.f32 %v3450_v33, 0.0  ;;  %v1503_v57 = vmax.f32 %v3482_v34, 0.0  ;;  %v3965_v33 = vld [vmem:[#allocation8 + $0xd4] ss:$8 sps:$4 sm:$0xff]   ;;  %2455 = vmatpush1.bf16.msra.mxu1 %v3960_v29 }
 0x1f0   :  { %v1504_v52 = vmax.f32 %v3451_v38, 0.0  ;;  %v1506_v53 = vmax.f32 %v3483_v41, 0.0  ;;  %2083 = vmatprep.subr.bf16.mxu0 %v3905_v32  ;;  %v3909_v32 = vld [vmem:[#allocation7 + $0x1b0] ss:$8 sps:$4 sm:$0xff]   ;;  %v3914_v41 = vld [vmem:[#allocation7 + $0x1c4] ss:$8 sps:$4 sm:$0xff]   ;;  %2456 = vmatprep.subr.bf16.mxu1 %v3965_v33 }
 0x1f1   :  { %v1505_v58 = vmax.f32 %v3452_v46, 0.0  ;;  %v1507_v60 = vmax.f32 %v3484_v47, 0.0 }
 0x1f2   :  { %v1544_v61 = vpack.c.bf16 %v1504_v52, %v1500_v50  ;;  %v4398_v62 = vpack.c.bf16 %v1506_v53, %v1502_v51 }
 0x1f3   :  { %v1545_v0 = vpack.c.bf16 %v1505_v58, %v1501_v55  ;;  %v4400_v1 = vpack.c.bf16 %v1507_v60, %v1503_v57  ;;  %v1215_v2 = vpop.f32.mrb[24].mxu0  ;;  %v1441_v4 = vpop.f32.mrb[24].mxu1  ;;  %2084 = vmatpush1.bf16.msra.mxu0 %v3903_v48  ;;  %2457 = vmatpush1.bf16.msra.mxu1 %v3963_v49 }
 0x1f4   :  { %v3453_v12 = vadd.f32 %v1215_v2, %v4321_v8  ;;  %v3485_v13 = vadd.f32 %v1441_v4, %v4323_v9  ;;  %v1217_v14 = vpop.f32.mrb[25].mxu0  ;;  %v1443_v15 = vpop.f32.mrb[25].mxu1  ;;  %2085 = vmatprep.subr.bf16.mxu0 %v3908_v54  ;;  %v3912_v54 = vld [vmem:[#allocation7 + $0x1c0] ss:$8 sps:$4 sm:$0xff]  }
 0x1f5   :  { %v3454_v17 = vadd.f32 %v1217_v14, %v4326_v10  ;;  %v3486_v20 = vadd.f32 %v1443_v15, %v4328_v11  ;;  %v1219_v22 = vpop.f32.mrb[26].mxu0  ;;  %v1445_v24 = vpop.f32.mrb[26].mxu1  ;;  %2034 = vmatprep.mubr.bf16.mxu0 %v1545_v0 }
 0x1f6   :  { %v3455_v25 = vadd.f32 %v1219_v22, %v4321_v8  ;;  %v3487_v26 = vadd.f32 %v1445_v24, %v4323_v9  ;;  %v1221_v27 = vpop.f32.mrb[27].mxu0  ;;  %v1447_v28 = vpop.f32.mrb[27].mxu1  ;;  %2035 = vmatmul.mubr.bf16.gmra.mrb[52].mxu0 %v1544_v61  ;;  %v1508_v34 = vmax.f32 %v3453_v12, 0.0  ;;  %v1510_v35 = vmax.f32 %v3485_v13, 0.0  ;;  %v3917_v61 = vld [vmem:[#allocation7 + $0x1d4] ss:$8 sps:$4 sm:$0xff]  }
 0x1f7   :  { %v3456_v30 = vadd.f32 %v1221_v27, %v4326_v10  ;;  %v3488_v31 = vadd.f32 %v1447_v28, %v4328_v11  ;;  %2086 = vmatpush1.bf16.msra.mxu0 %v3906_v5  ;;  %v1509_v42 = vmax.f32 %v3454_v17, 0.0  ;;  %v1511_v44 = vmax.f32 %v3486_v20, 0.0 }
 0x1f8   :  { %v1512_v37 = vmax.f32 %v3455_v25, 0.0  ;;  %v1514_v38 = vmax.f32 %v3487_v26, 0.0  ;;  %2087 = vmatprep.subr.bf16.mxu0 %v3911_v16  ;;  %v3915_v16 = vld [vmem:[#allocation7 + $0x1d0] ss:$8 sps:$4 sm:$0xff]   ;;  %v3920_v25 = vld [vmem:[#allocation7 + $0x1e4] ss:$8 sps:$4 sm:$0xff]  }
 0x1f9   :  { %v1513_v45 = vmax.f32 %v3456_v30, 0.0  ;;  %v1515_v46 = vmax.f32 %v3488_v31, 0.0 }
 0x1fa   :  { %v1548_v47 = vpack.c.bf16 %v1512_v37, %v1508_v34  ;;  %v4410_v48 = vpack.c.bf16 %v1514_v38, %v1510_v35 }
 0x1fb   :  { %v1549_v50 = vpack.c.bf16 %v1513_v45, %v1509_v42  ;;  %v1551_v51 = vpack.c.bf16 %v1515_v46, %v1511_v44  ;;  %v1225_v52 = vpop.f32.mrb[28].mxu0  ;;  %v1451_v53 = vpop.f32.mrb[28].mxu1  ;;  %2088 = vmatpush1.bf16.msra.mxu0 %v3909_v32  ;;  %v3921_v32 = vld [vmem:[#allocation7 + $0x1f0] ss:$8 sps:$4 sm:$0xff]  }
 0x1fc   :  { %v3457_v55 = vadd.f32 %v1225_v52, %v4321_v8  ;;  %v3489_v57 = vadd.f32 %v1451_v53, %v4323_v9  ;;  %v1227_v58 = vpop.f32.mrb[29].mxu0  ;;  %v1453_v60 = vpop.f32.mrb[29].mxu1  ;;  %2089 = vmatprep.subr.bf16.mxu0 %v3914_v41 }
 0x1fd   :  { %v3458_v63 = vadd.f32 %v1227_v58, %v4326_v10  ;;  %v3490_v0 = vadd.f32 %v1453_v60, %v4328_v11  ;;  %v1229_v2 = vpop.f32.mrb[30].mxu0  ;;  %v1455_v4 = vpop.f32.mrb[30].mxu1  ;;  %2044 = vmatprep.mubr.bf16.mxu0 %v1549_v50  ;;  %v3975_v58 = vld [vmem:[#allocation10 + $0x8] sm:$0xff]  }
 0x1fe   :  { %v3459_v5 = vadd.f32 %v1229_v2, %v4321_v8  ;;  %v3491_v7 = vadd.f32 %v1455_v4, %v4323_v9  ;;  %v1231_v12 = vpop.f32.mrb[31].mxu0  ;;  %v1457_v13 = vpop.f32.mrb[31].mxu1  ;;  %2045 = vmatmul.mubr.bf16.gmra.mrb[56].mxu0 %v1548_v47  ;;  %v1516_v17 = vmax.f32 %v3457_v55, 0.0  ;;  %v1518_v20 = vmax.f32 %v3489_v57, 0.0 }
 0x1ff   :  { %v3460_v14 = vadd.f32 %v1231_v12, %v4326_v10  ;;  %v3492_v15 = vadd.f32 %v1457_v13, %v4328_v11  ;;  %2090 = vmatpush1.bf16.msra.mxu0 %v3912_v54  ;;  %v1517_v26 = vmax.f32 %v3458_v63, 0.0  ;;  %v1519_v8 = vmax.f32 %v3490_v0, 0.0  ;;  %v3918_v10 = vld [vmem:[#allocation7 + $0x1e0] ss:$8 sps:$4 sm:$0xff]   ;;  %v3923_v11 = vld [vmem:[#allocation7 + $0x1f4] ss:$8 sps:$4 sm:$0xff]  }
 0x200   :  { %v1520_v22 = vmax.f32 %v3459_v5, 0.0  ;;  %v1522_v24 = vmax.f32 %v3491_v7, 0.0  ;;  %2091 = vmatprep.subr.bf16.mxu0 %v3917_v61  ;;  %v3976_v63 = vld [vmem:[#allocation10 + $0x50] sm:$0xff]  }
 0x201   :  { %v1521_v27 = vmax.f32 %v3460_v14, 0.0  ;;  %v1523_v9 = vmax.f32 %v3492_v15, 0.0  ;;  %v3977_v12 = vld [vmem:[#allocation10 + $0x10] sm:$0xff]   ;;  %v3978_v15 = vld [vmem:[#allocation10 + $0x58] sm:$0xff]  }
 0x202   :  { %v1552_v28 = vpack.c.bf16 %v1520_v22, %v1516_v17  ;;  %v1554_v29 = vpack.c.bf16 %v1522_v24, %v1518_v20 }
 0x203   :  { %v1553_v30 = vpack.c.bf16 %v1521_v27, %v1517_v26  ;;  %v1555_v31 = vpack.c.bf16 %v1523_v9, %v1519_v8  ;;  %2092 = vmatpush1.bf16.msra.mxu0 %v3915_v16  ;;  %v3980_v27 = vld [vmem:[#allocation10 + $0x60] sm:$0xff]  }
 0x204   :  { %2093 = vmatprep.subr.bf16.mxu0 %v3920_v25  ;;  %v3979_v25 = vld [vmem:[#allocation10 + $0x18] sm:$0xff]  }
 0x205   :  { %2054 = vmatprep.mubr.bf16.mxu0 %v1553_v30 }
 0x206   :  { %2055 = vmatmul.mubr.bf16.gmra.mrb[60].mxu0 %v1552_v28 }
 0x207   :  { %2094 = vmatpush1.bf16.msra.mxu0 %v3918_v10  ;;  %2097 = vmatprep.mubr.bf16.mxu0 %v4340_v43  ;;  %v3966_v43 = vld [vmem:[#allocation8 + $0xe0] ss:$8 sps:$4 sm:$0xff]  }
 0x208   :  { %2095 = vmatprep.subr.bf16.mxu0 %v3923_v11  ;;  %v3981_v10 = vld [vmem:[#allocation10 + $0x20] sm:$0xff]  }
 0x20b   :  { %2096 = vmatpush1.bf16.msra.mxu0 %v3921_v32 }
 0x20e   :  { %2098 = vmatmul.mubr.bf16.vlgmr.msra.gmra.mrb[32].mxu0 %v4338_v40  ;;  %v3968_v40 = vld [vmem:[#allocation8 + $0xe4] ss:$8 sps:$4 sm:$0xff]  }
 0x20f   :  { %2107 = vmatprep.mubr.bf16.mxu0 %v4352_v21  ;;  %2458 = vmatprep.subr.bf16.mxu1 %v3968_v40  ;;  %v3969_v21 = vld [vmem:[#allocation8 + $0xf0] ss:$8 sps:$4 sm:$0xff]   ;;  %v3982_v40 = vld [vmem:[#allocation10 + $0x68] sm:$0xff]  }
 0x210   :  { %2459 = vmatpush1.bf16.msra.mxu1 %v3966_v43 }
 0x216   :  { %2108 = vmatmul.mubr.bf16.gmra.mrb[36].mxu0 %v4350_v18  ;;  %v3971_v18 = vld [vmem:[#allocation8 + $0xf4] ss:$8 sps:$4 sm:$0xff]  }
 0x217   :  { %2117 = vmatprep.mubr.bf16.mxu0 %v4364_v59  ;;  %2460 = vmatprep.subr.bf16.mxu1 %v3971_v18  ;;  %v1620_v59 = vld [vmem:[%s4558_s4] sm:$0x3] }
 0x218   :  { %2461 = vmatpush1.bf16.msra.mxu1 %v3969_v21 }
 0x21e   :  { %2118 = vmatmul.mubr.bf16.gmra.mrb[40].mxu0 %v4362_v56  ;;  %v3972_v56 = vld [vmem:[#allocation10 + $0x40] sm:$0xff]  }
 0x21f   :  { %2127 = vmatprep.mubr.bf16.mxu0 %v4376_v39  ;;  %3301 = vmatprep.subr.bf16.mxu1 %v3972_v56  ;;  %v4440_v39 = vrot.slane %v1620_v59, %v4318_v6 }
 0x226   :  { %2128 = vmatmul.mubr.bf16.gmra.mrb[44].mxu0 %v4374_v36  ;;  %v4437_v36 = vrot.slane %v1620_v59, %v4313_v3 }
 0x227   :  { %2137 = vmatprep.mubr.bf16.mxu0 %v4388_v23 }
 0x22e   :  { %2138 = vmatmul.mubr.bf16.gmra.mrb[48].mxu0 %v4386_v19 }
 0x22f   :  { %2147 = vmatprep.mubr.bf16.mxu0 %v4400_v1 }
 0x236   :  { %2148 = vmatmul.mubr.bf16.gmra.mrb[52].mxu0 %v4398_v62 }
 0x237   :  { %2157 = vmatprep.mubr.bf16.mxu0 %v1551_v51  ;;  %v3974_v51 = vld [vmem:[#allocation10 + $0x48] sm:$0xff]  }
 0x23e   :  { %2158 = vmatmul.mubr.bf16.gmra.mrb[56].mxu0 %v4410_v48  ;;  %v3973_v48 = vld [vmem:[#allocation10] sm:$0xff]  }
 0x23f   :  { %2167 = vmatprep.mubr.bf16.mxu0 %v1555_v31 }
 0x246   :  { %2168 = vmatmul.mubr.bf16.gmra.mrb[60].mxu0 %v1554_v29 }
 0x2e1   :  { %v2099_v19 = vpop.f32.mrb[32].mxu0 }
 0x2e2   :  { %v3493_v23 = vadd.f32 %v2099_v19, %v4437_v36  ;;  %v2101_v62 = vpop.f32.mrb[33].mxu0  ;;  %v3983_v19 = vld [vmem:[#allocation10 + $0x28] sm:$0xff]  }
 0x2e3   :  { %v3494_v1 = vadd.f32 %v2101_v62, %v4440_v39  ;;  %v2103_v33 = vpop.f32.mrb[34].mxu0 }
 0x2e4   :  { %v3495_v34 = vadd.f32 %v2103_v33, %v4437_v36  ;;  %v2105_v35 = vpop.f32.mrb[35].mxu0  ;;  %v2178_v38 = vmax.f32 %v3493_v23, 0.0 }
 0x2e5   :  { %v3496_v37 = vadd.f32 %v2105_v35, %v4440_v39  ;;  %v2179_v42 = vmax.f32 %v3494_v1, 0.0  ;;  %v3984_v1 = vld [vmem:[#allocation10 + $0x70] sm:$0xff]  }
 0x2e6   :  { %v2180_v41 = vmax.f32 %v3495_v34, 0.0 }
 0x2e7   :  { %v2181_v44 = vmax.f32 %v3496_v37, 0.0 }
 0x2e8   :  { %v2210_v45 = vpack.c.bf16 %v2180_v41, %v2178_v38  ;;  %v3985_v41 = vld [vmem:[#allocation10 + $0x30] sm:$0xff]  }
 0x2e9   :  { %v2211_v46 = vpack.c.bf16 %v2181_v44, %v2179_v42  ;;  %v2109_v47 = vpop.f32.mrb[36].mxu0 }
 0x2ea   :  { %v3497_v49 = vadd.f32 %v2109_v47, %v4437_v36  ;;  %v2111_v50 = vpop.f32.mrb[37].mxu0 }
 0x2eb   :  { %v3498_v52 = vadd.f32 %v2111_v50, %v4440_v39  ;;  %v2113_v53 = vpop.f32.mrb[38].mxu0  ;;  %2462 = vmatprep.mubr.bf16.mxu1 %v2211_v46 }
 0x2ec   :  { %v3499_v54 = vadd.f32 %v2113_v53, %v4437_v36  ;;  %v2115_v55 = vpop.f32.mrb[39].mxu0  ;;  %2463 = vmatmul.mubr.bf16.vlgmr.msra.gmra.mrb[32].mxu1 %v2210_v45  ;;  %v2182_v60 = vmax.f32 %v3497_v49, 0.0 }
 0x2ed   :  { %v3500_v57 = vadd.f32 %v2115_v55, %v4440_v39  ;;  %3302 = vmatpush3.bf16.msra.mxu1 %v3973_v48  ;;  %v2183_v0 = vmax.f32 %v3498_v52, 0.0 }
 0x2ee   :  { %v2184_v61 = vmax.f32 %v3499_v54, 0.0  ;;  %3303 = vmatprep.subr.bf16.mxu1 %v3974_v51 }
 0x2ef   :  { %v2185_v2 = vmax.f32 %v3500_v57, 0.0 }
 0x2f0   :  { %v2212_v4 = vpack.c.bf16 %v2184_v61, %v2182_v60 }
 0x2f1   :  { %v2213_v5 = vpack.c.bf16 %v2185_v2, %v2183_v0  ;;  %v2119_v7 = vpop.f32.mrb[40].mxu0  ;;  %3304 = vmatpush3.bf16.msra.mxu1 %v3975_v58 }
 0x2f2   :  { %v3501_v13 = vadd.f32 %v2119_v7, %v4437_v36  ;;  %v2121_v14 = vpop.f32.mrb[41].mxu0  ;;  %3305 = vmatprep.subr.bf16.mxu1 %v3976_v63 }
 0x2f3   :  { %v3502_v16 = vadd.f32 %v2121_v14, %v4440_v39  ;;  %v2123_v17 = vpop.f32.mrb[42].mxu0  ;;  %2472 = vmatprep.mubr.bf16.mxu1 %v2213_v5 }
 0x2f4   :  { %v3503_v20 = vadd.f32 %v2123_v17, %v4437_v36  ;;  %v2125_v22 = vpop.f32.mrb[43].mxu0  ;;  %2473 = vmatmul.mubr.bf16.gmra.mrb[36].mxu1 %v2212_v4  ;;  %v2186_v26 = vmax.f32 %v3501_v13, 0.0 }
 0x2f5   :  { %v3504_v24 = vadd.f32 %v2125_v22, %v4440_v39  ;;  %3306 = vmatpush3.bf16.msra.mxu1 %v3977_v12  ;;  %v2187_v9 = vmax.f32 %v3502_v16, 0.0 }
 0x2f6   :  { %v2188_v8 = vmax.f32 %v3503_v20, 0.0  ;;  %3307 = vmatprep.subr.bf16.mxu1 %v3978_v15 }
 0x2f7   :  { %v2189_v28 = vmax.f32 %v3504_v24, 0.0 }
 0x2f8   :  { %v2214_v29 = vpack.c.bf16 %v2188_v8, %v2186_v26 }
 0x2f9   :  { %v2215_v30 = vpack.c.bf16 %v2189_v28, %v2187_v9  ;;  %v2129_v31 = vpop.f32.mrb[44].mxu0  ;;  %3308 = vmatpush3.bf16.msra.mxu1 %v3979_v25 }
 0x2fa   :  { %v3505_v11 = vadd.f32 %v2129_v31, %v4437_v36  ;;  %v2131_v32 = vpop.f32.mrb[45].mxu0  ;;  %3309 = vmatprep.subr.bf16.mxu1 %v3980_v27 }
 0x2fb   :  { %v3506_v43 = vadd.f32 %v2131_v32, %v4440_v39  ;;  %v2133_v18 = vpop.f32.mrb[46].mxu0  ;;  %2482 = vmatprep.mubr.bf16.mxu1 %v2215_v30 }
 0x2fc   :  { %v3507_v21 = vadd.f32 %v2133_v18, %v4437_v36  ;;  %v2135_v56 = vpop.f32.mrb[47].mxu0  ;;  %2483 = vmatmul.mubr.bf16.gmra.mrb[40].mxu1 %v2214_v29  ;;  %v2190_v23 = vmax.f32 %v3505_v11, 0.0 }
 0x2fd   :  { %v3508_v59 = vadd.f32 %v2135_v56, %v4440_v39  ;;  %3310 = vmatpush3.bf16.msra.mxu1 %v3981_v10  ;;  %v2191_v33 = vmax.f32 %v3506_v43, 0.0 }
 0x2fe   :  { %v2192_v62 = vmax.f32 %v3507_v21, 0.0  ;;  %3311 = vmatprep.subr.bf16.mxu1 %v3982_v40 }
 0x2ff   :  { %v2193_v34 = vmax.f32 %v3508_v59, 0.0 }
 0x300   :  { %v2216_v35 = vpack.c.bf16 %v2192_v62, %v2190_v23 }
 0x301   :  { %v2217_v37 = vpack.c.bf16 %v2193_v34, %v2191_v33  ;;  %v2139_v38 = vpop.f32.mrb[48].mxu0  ;;  %3312 = vmatpush3.bf16.msra.mxu1 %v3983_v19  ;;  %v3986_v34 = vld [vmem:[#allocation10 + $0x78] sm:$0xff]  }
 0x302   :  { %v3509_v42 = vadd.f32 %v2139_v38, %v4437_v36  ;;  %v2141_v44 = vpop.f32.mrb[49].mxu0  ;;  %3313 = vmatprep.subr.bf16.mxu1 %v3984_v1  ;;  %v3989_v38 = vld [vmem:[#allocation11 + $0x8] sm:$0xff]  }
 0x303   :  { %v3510_v45 = vadd.f32 %v2141_v44, %v4440_v39  ;;  %v2143_v46 = vpop.f32.mrb[50].mxu0  ;;  %2492 = vmatprep.mubr.bf16.mxu1 %v2217_v37  ;;  %v3988_v37 = vld [vmem:[#allocation11] sm:$0xff]  }
 0x304   :  { %v3511_v47 = vadd.f32 %v2143_v46, %v4437_v36  ;;  %v2145_v48 = vpop.f32.mrb[51].mxu0  ;;  %2493 = vmatmul.mubr.bf16.gmra.mrb[44].mxu1 %v2216_v35  ;;  %v2194_v50 = vmax.f32 %v3509_v42, 0.0  ;;  %v3987_v35 = vld [vmem:[#allocation10 + $0x38] sm:$0xff]   ;;  %3381 = vmatprep.subr.bf16.mxu0 %v3988_v37 }
 0x305   :  { %v3512_v49 = vadd.f32 %v2145_v48, %v4440_v39  ;;  %3314 = vmatpush3.bf16.msra.mxu1 %v3985_v41  ;;  %v2195_v52 = vmax.f32 %v3510_v45, 0.0  ;;  %3382 = vmatpush3.bf16.msra.mxu0 %v3988_v37 }
 0x306   :  { %v2196_v51 = vmax.f32 %v3511_v47, 0.0  ;;  %3315 = vmatprep.subr.bf16.mxu1 %v3986_v34  ;;  %3383 = vmatprep.subr.bf16.mxu0 %v3989_v38 }
 0x307   :  { %v2197_v53 = vmax.f32 %v3512_v49, 0.0 }
 0x308   :  { %v2218_v54 = vpack.c.bf16 %v2196_v51, %v2194_v50 }
 0x309   :  { %v2219_v55 = vpack.c.bf16 %v2197_v53, %v2195_v52  ;;  %v2149_v57 = vpop.f32.mrb[52].mxu0  ;;  %3316 = vmatpush3.bf16.msra.mxu1 %v3987_v35  ;;  %3384 = vmatpush3.bf16.msra.mxu0 %v3989_v38 }
 0x30a   :  { %v3513_v58 = vadd.f32 %v2149_v57, %v4437_v36  ;;  %v2151_v60 = vpop.f32.mrb[53].mxu0  ;;  %3413 = vmatprep.subr.bf16.mxu1 %v3988_v37 }
 0x30b   :  { %v3514_v61 = vadd.f32 %v2151_v60, %v4440_v39  ;;  %v2153_v63 = vpop.f32.mrb[54].mxu0  ;;  %2502 = vmatprep.mubr.bf16.mxu1 %v2219_v55 }
 0x30c   :  { %v3515_v0 = vadd.f32 %v2153_v63, %v4437_v36  ;;  %v2155_v2 = vpop.f32.mrb[55].mxu0  ;;  %2503 = vmatmul.mubr.bf16.gmra.mrb[48].mxu1 %v2218_v54  ;;  %v2198_v5 = vmax.f32 %v3513_v58, 0.0 }
 0x30d   :  { %v3516_v4 = vadd.f32 %v2155_v2, %v4440_v39  ;;  %v2199_v12 = vmax.f32 %v3514_v61, 0.0 }
 0x30e   :  { %v2200_v7 = vmax.f32 %v3515_v0, 0.0 }
 0x30f   :  { %v2201_v13 = vmax.f32 %v3516_v4, 0.0 }
 0x310   :  { %v2220_v14 = vpack.c.bf16 %v2200_v7, %v2198_v5 }
 0x311   :  { %v2221_v15 = vpack.c.bf16 %v2201_v13, %v2199_v12  ;;  %v2159_v16 = vpop.f32.mrb[56].mxu0 }
 0x312   :  { %v3517_v17 = vadd.f32 %v2159_v16, %v4437_v36  ;;  %v2161_v20 = vpop.f32.mrb[57].mxu0 }
 0x313   :  { %v3518_v22 = vadd.f32 %v2161_v20, %v4440_v39  ;;  %v2163_v24 = vpop.f32.mrb[58].mxu0  ;;  %2512 = vmatprep.mubr.bf16.mxu1 %v2221_v15 }
 0x314   :  { %v3519_v25 = vadd.f32 %v2163_v24, %v4437_v36  ;;  %v2165_v26 = vpop.f32.mrb[59].mxu0  ;;  %2513 = vmatmul.mubr.bf16.gmra.mrb[52].mxu1 %v2220_v14  ;;  %v2202_v27 = vmax.f32 %v3517_v17, 0.0 }
 0x315   :  { %v3520_v8 = vadd.f32 %v2165_v26, %v4440_v39  ;;  %v2203_v28 = vmax.f32 %v3518_v22, 0.0 }
 0x316   :  { %v2204_v9 = vmax.f32 %v3519_v25, 0.0 }
 0x317   :  { %v2205_v29 = vmax.f32 %v3520_v8, 0.0 }
 0x318   :  { %v2222_v30 = vpack.c.bf16 %v2204_v9, %v2202_v27 }
 0x319   :  { %v2223_v31 = vpack.c.bf16 %v2205_v29, %v2203_v28  ;;  %v2169_v10 = vpop.f32.mrb[60].mxu0 }
 0x31a   :  { %v3521_v11 = vadd.f32 %v2169_v10, %v4437_v36  ;;  %v2171_v32 = vpop.f32.mrb[61].mxu0 }
 0x31b   :  { %v3522_v40 = vadd.f32 %v2171_v32, %v4440_v39  ;;  %v2173_v43 = vpop.f32.mrb[62].mxu0  ;;  %2522 = vmatprep.mubr.bf16.mxu1 %v2223_v31 }
 0x31c   :  { %v3523_v18 = vadd.f32 %v2173_v43, %v4437_v36  ;;  %v2175_v21 = vpop.f32.mrb[63].mxu0  ;;  %2523 = vmatmul.mubr.bf16.gmra.mrb[56].mxu1 %v2222_v30  ;;  %v2206_v59 = vmax.f32 %v3521_v11, 0.0  ;;  %v3990_v36 = vld [vmem:[#allocation11 + $0x10] sm:$0xff]  }
 0x31d   :  { %v3524_v56 = vadd.f32 %v2175_v21, %v4440_v39  ;;  %v2207_v23 = vmax.f32 %v3522_v40, 0.0  ;;  %3385 = vmatprep.subr.bf16.mxu0 %v3990_v36  ;;  %v2258_v39 = vld [vmem:[%s4560_s6] sm:$0x3] }
 0x31e   :  { %v2208_v19 = vmax.f32 %v3523_v18, 0.0  ;;  %3386 = vmatpush3.bf16.msra.mxu0 %v3990_v36  ;;  %v4478_v41 = vrot.slane %v2258_v39, %v4313_v3  ;;  %v4481_v42 = vrot.slane %v2258_v39, %v4318_v6 }
 0x31f   :  { %v2209_v62 = vmax.f32 %v3524_v56, 0.0 }
 0x320   :  { %v2224_v1 = vpack.c.bf16 %v2208_v19, %v2206_v59 }
 0x321   :  { %v2225_v33 = vpack.c.bf16 %v2209_v62, %v2207_v23 }
 0x323   :  { %2532 = vmatprep.mubr.bf16.mxu1 %v2225_v33 }
 0x324   :  { %2533 = vmatmul.mubr.bf16.gmra.mrb[60].mxu1 %v2224_v1 }
 0x3bf   :  { %v2464_v44 = vpop.f32.mrb[32].mxu1 }
 0x3c0   :  { %v2465_v45 = vadd.f32 %v2464_v44, %v4478_v41  ;;  %v2466_v46 = vpop.f32.mrb[33].mxu1 }
 0x3c1   :  { %v2467_v47 = vadd.f32 %v2466_v46, %v4481_v42  ;;  %v2468_v48 = vpop.f32.mrb[34].mxu1 }
 0x3c2   :  { %v2469_v49 = vadd.f32 %v2468_v48, %v4478_v41  ;;  %v2470_v50 = vpop.f32.mrb[35].mxu1  ;;  %v2543_v52 = vmax.f32 %v2465_v45, 0.0 }
 0x3c3   :  { %v2471_v51 = vadd.f32 %v2470_v50, %v4481_v42  ;;  %v2544_v54 = vmax.f32 %v2467_v47, 0.0 }
 0x3c4   :  { %v2545_v53 = vmax.f32 %v2469_v49, 0.0 }
 0x3c5   :  { %v2546_v3 = vmax.f32 %v2471_v51, 0.0 }
 0x3c6   :  { %v2575_v55 = vpack.c.bf16 %v2545_v53, %v2543_v52 }
 0x3c7   :  { %v2576_v57 = vpack.c.bf16 %v2546_v3, %v2544_v54  ;;  %v2474_v6 = vpop.f32.mrb[36].mxu1 }
 0x3c8   :  { %v2475_v58 = vadd.f32 %v2474_v6, %v4478_v41  ;;  %v2476_v60 = vpop.f32.mrb[37].mxu1 }
 0x3c9   :  { %v2477_v61 = vadd.f32 %v2476_v60, %v4481_v42  ;;  %v2478_v63 = vpop.f32.mrb[38].mxu1  ;;  %2758 = vmatprep.mubr.bf16.mxu1 %v2576_v57 }
 0x3ca   :  { %v2479_v0 = vadd.f32 %v2478_v63, %v4478_v41  ;;  %v2480_v2 = vpop.f32.mrb[39].mxu1  ;;  %2759 = vmatmul.mubr.bf16.vlgmr.msra.gmra.mrb[64].mxu1 %v2575_v55  ;;  %v2547_v5 = vmax.f32 %v2475_v58, 0.0 }
 0x3cb   :  { %v2481_v4 = vadd.f32 %v2480_v2, %v4481_v42  ;;  %3421 = vmatpush3.bf16.msra.mxu1 %v3988_v37  ;;  %v2548_v12 = vmax.f32 %v2477_v61, 0.0 }
 0x3cc   :  { %v2549_v7 = vmax.f32 %v2479_v0, 0.0  ;;  %3414 = vmatprep.subr.bf16.mxu1 %v3989_v38 }
 0x3cd   :  { %v2550_v13 = vmax.f32 %v2481_v4, 0.0 }
 0x3ce   :  { %v2577_v14 = vpack.c.bf16 %v2549_v7, %v2547_v5 }
 0x3cf   :  { %v2578_v15 = vpack.c.bf16 %v2550_v13, %v2548_v12  ;;  %v2484_v16 = vpop.f32.mrb[40].mxu1  ;;  %3422 = vmatpush3.bf16.msra.mxu1 %v3989_v38 }
 0x3d0   :  { %v2485_v17 = vadd.f32 %v2484_v16, %v4478_v41  ;;  %v2486_v20 = vpop.f32.mrb[41].mxu1  ;;  %3415 = vmatprep.subr.bf16.mxu1 %v3990_v36 }
 0x3d1   :  { %v2487_v22 = vadd.f32 %v2486_v20, %v4481_v42  ;;  %v2488_v24 = vpop.f32.mrb[42].mxu1  ;;  %2766 = vmatprep.mubr.bf16.mxu1 %v2578_v15 }
 0x3d2   :  { %v2489_v25 = vadd.f32 %v2488_v24, %v4478_v41  ;;  %v2490_v26 = vpop.f32.mrb[43].mxu1  ;;  %2767 = vmatmul.mubr.bf16.gmra.mrb[68].mxu1 %v2577_v14  ;;  %v2551_v27 = vmax.f32 %v2485_v17, 0.0 }
 0x3d3   :  { %v2491_v8 = vadd.f32 %v2490_v26, %v4481_v42  ;;  %3423 = vmatpush3.bf16.msra.mxu1 %v3990_v36  ;;  %v2552_v28 = vmax.f32 %v2487_v22, 0.0 }
 0x3d4   :  { %v2553_v9 = vmax.f32 %v2489_v25, 0.0 }
 0x3d5   :  { %v2554_v29 = vmax.f32 %v2491_v8, 0.0 }
 0x3d6   :  { %v2579_v30 = vpack.c.bf16 %v2553_v9, %v2551_v27 }
 0x3d7   :  { %v2580_v31 = vpack.c.bf16 %v2554_v29, %v2552_v28  ;;  %v2494_v10 = vpop.f32.mrb[44].mxu1 }
 0x3d8   :  { %v2495_v11 = vadd.f32 %v2494_v10, %v4478_v41  ;;  %v2496_v32 = vpop.f32.mrb[45].mxu1 }
 0x3d9   :  { %v2497_v40 = vadd.f32 %v2496_v32, %v4481_v42  ;;  %v2498_v43 = vpop.f32.mrb[46].mxu1  ;;  %2774 = vmatprep.mubr.bf16.mxu1 %v2580_v31 }
 0x3da   :  { %v2499_v18 = vadd.f32 %v2498_v43, %v4478_v41  ;;  %v2500_v21 = vpop.f32.mrb[47].mxu1  ;;  %2775 = vmatmul.mubr.bf16.gmra.mrb[72].mxu1 %v2579_v30  ;;  %v2555_v59 = vmax.f32 %v2495_v11, 0.0 }
 0x3db   :  { %v2501_v56 = vadd.f32 %v2500_v21, %v4481_v42  ;;  %v2556_v23 = vmax.f32 %v2497_v40, 0.0 }
 0x3dc   :  { %v2557_v19 = vmax.f32 %v2499_v18, 0.0 }
 0x3dd   :  { %v2558_v62 = vmax.f32 %v2501_v56, 0.0 }
 0x3de   :  { %v2581_v1 = vpack.c.bf16 %v2557_v19, %v2555_v59  ;;  %v3991_v59 = vld [vmem:[#allocation11 + $0x18] sm:$0xff]   ;;  %v3992_v19 = vld [vmem:[#allocation11 + $0x20] sm:$0xff]  }
 0x3df   :  { %v2582_v33 = vpack.c.bf16 %v2558_v62, %v2556_v23  ;;  %v2504_v34 = vpop.f32.mrb[48].mxu1  ;;  %3387 = vmatprep.subr.bf16.mxu0 %v3991_v59  ;;  %3416 = vmatprep.subr.bf16.mxu1 %v3991_v59  ;;  %v3995_v23 = vld [vmem:[#allocation11 + $0x38] sm:$0xff]  }
 0x3e0   :  { %v2505_v35 = vadd.f32 %v2504_v34, %v4478_v41  ;;  %v2506_v37 = vpop.f32.mrb[49].mxu1  ;;  %3388 = vmatpush3.bf16.msra.mxu0 %v3991_v59  ;;  %3424 = vmatpush3.bf16.msra.mxu1 %v3991_v59 }
 0x3e1   :  { %v2507_v38 = vadd.f32 %v2506_v37, %v4481_v42  ;;  %v2508_v36 = vpop.f32.mrb[50].mxu1  ;;  %2782 = vmatprep.mubr.bf16.mxu1 %v2582_v33  ;;  %3389 = vmatprep.subr.bf16.mxu0 %v3992_v19 }
 0x3e2   :  { %v2509_v39 = vadd.f32 %v2508_v36, %v4478_v41  ;;  %v2510_v44 = vpop.f32.mrb[51].mxu1  ;;  %2783 = vmatmul.mubr.bf16.gmra.mrb[76].mxu1 %v2581_v1  ;;  %v2559_v46 = vmax.f32 %v2505_v35, 0.0  ;;  %3417 = vmatprep.subr.bf16.mxu1 %v3992_v19  ;;  %v4518_v1 = vld [vmem:[%s4562_s8] ss:$0 sm:$0xff] }
 0x3e3   :  { %v2511_v45 = vadd.f32 %v2510_v44, %v4481_v42  ;;  %v2560_v48 = vmax.f32 %v2507_v38, 0.0 }
 0x3e4   :  { %v2561_v47 = vmax.f32 %v2509_v39, 0.0  ;;  %3390 = vmatpush3.bf16.msra.mxu0 %v3992_v19  ;;  %3425 = vmatpush3.bf16.msra.mxu1 %v3992_v19 }
 0x3e5   :  { %v2562_v49 = vmax.f32 %v2511_v45, 0.0 }
 0x3e6   :  { %v2583_v50 = vpack.c.bf16 %v2561_v47, %v2559_v46 }
 0x3e7   :  { %v2584_v51 = vpack.c.bf16 %v2562_v49, %v2560_v48  ;;  %v2514_v52 = vpop.f32.mrb[52].mxu1 }
 0x3e8   :  { %v2515_v53 = vadd.f32 %v2514_v52, %v4478_v41  ;;  %v2516_v54 = vpop.f32.mrb[53].mxu1 }
 0x3e9   :  { %v2517_v3 = vadd.f32 %v2516_v54, %v4481_v42  ;;  %v2518_v55 = vpop.f32.mrb[54].mxu1  ;;  %2790 = vmatprep.mubr.bf16.mxu1 %v2584_v51 }
 0x3ea   :  { %v2519_v57 = vadd.f32 %v2518_v55, %v4478_v41  ;;  %v2520_v6 = vpop.f32.mrb[55].mxu1  ;;  %2791 = vmatmul.mubr.bf16.gmra.mrb[80].mxu1 %v2583_v50  ;;  %v2563_v60 = vmax.f32 %v2515_v53, 0.0 }
 0x3eb   :  { %v2521_v58 = vadd.f32 %v2520_v6, %v4481_v42  ;;  %v2564_v63 = vmax.f32 %v2517_v3, 0.0 }
 0x3ec   :  { %v2565_v61 = vmax.f32 %v2519_v57, 0.0 }
 0x3ed   :  { %v2566_v0 = vmax.f32 %v2521_v58, 0.0 }
 0x3ee   :  { %v2585_v2 = vpack.c.bf16 %v2565_v61, %v2563_v60 }
 0x3ef   :  { %v2586_v4 = vpack.c.bf16 %v2566_v0, %v2564_v63  ;;  %v2524_v5 = vpop.f32.mrb[56].mxu1 }
 0x3f0   :  { %v2525_v7 = vadd.f32 %v2524_v5, %v4478_v41  ;;  %v2526_v12 = vpop.f32.mrb[57].mxu1 }
 0x3f1   :  { %v2527_v13 = vadd.f32 %v2526_v12, %v4481_v42  ;;  %v2528_v14 = vpop.f32.mrb[58].mxu1  ;;  %2798 = vmatprep.mubr.bf16.mxu1 %v2586_v4 }
 0x3f2   :  { %v2529_v15 = vadd.f32 %v2528_v14, %v4478_v41  ;;  %v2530_v16 = vpop.f32.mrb[59].mxu1  ;;  %2799 = vmatmul.mubr.bf16.gmra.mrb[84].mxu1 %v2585_v2  ;;  %v2567_v20 = vmax.f32 %v2525_v7, 0.0 }
 0x3f3   :  { %v2531_v17 = vadd.f32 %v2530_v16, %v4481_v42  ;;  %v2568_v24 = vmax.f32 %v2527_v13, 0.0 }
 0x3f4   :  { %v2569_v22 = vmax.f32 %v2529_v15, 0.0 }
 0x3f5   :  { %v2570_v25 = vmax.f32 %v2531_v17, 0.0 }
 0x3f6   :  { %v2587_v26 = vpack.c.bf16 %v2569_v22, %v2567_v20 }
 0x3f7   :  { %v2588_v8 = vpack.c.bf16 %v2570_v25, %v2568_v24  ;;  %v2534_v27 = vpop.f32.mrb[60].mxu1 }
 0x3f8   :  { %v2535_v9 = vadd.f32 %v2534_v27, %v4478_v41  ;;  %v2536_v28 = vpop.f32.mrb[61].mxu1 }
 0x3f9   :  { %v2537_v29 = vadd.f32 %v2536_v28, %v4481_v42  ;;  %v2538_v30 = vpop.f32.mrb[62].mxu1  ;;  %2806 = vmatprep.mubr.bf16.mxu1 %v2588_v8 }
 0x3fa   :  { %v2539_v31 = vadd.f32 %v2538_v30, %v4478_v41  ;;  %v2540_v10 = vpop.f32.mrb[63].mxu1  ;;  %2807 = vmatmul.mubr.bf16.gmra.mrb[88].mxu1 %v2587_v26  ;;  %v2571_v32 = vmax.f32 %v2535_v9, 0.0  ;;  %v3993_v41 = vld [vmem:[#allocation11 + $0x28] sm:$0xff]  }
 0x3fb   :  { %v2541_v11 = vadd.f32 %v2540_v10, %v4481_v42  ;;  %v2572_v43 = vmax.f32 %v2537_v29, 0.0  ;;  %3391 = vmatprep.subr.bf16.mxu0 %v3993_v41  ;;  %3418 = vmatprep.subr.bf16.mxu1 %v3993_v41  ;;  %v3994_v42 = vld [vmem:[#allocation11 + $0x30] sm:$0xff]  }
 0x3fc   :  { %v2573_v40 = vmax.f32 %v2539_v31, 0.0  ;;  %3392 = vmatpush3.bf16.msra.mxu0 %v3993_v41  ;;  %3426 = vmatpush3.bf16.msra.mxu1 %v3993_v41 }
 0x3fd   :  { %v2574_v18 = vmax.f32 %v2541_v11, 0.0  ;;  %3393 = vmatprep.subr.bf16.mxu0 %v3994_v42  ;;  %3419 = vmatprep.subr.bf16.mxu1 %v3994_v42 }
 0x3fe   :  { %v2589_v21 = vpack.c.bf16 %v2573_v40, %v2571_v32 }
 0x3ff   :  { %v2590_v56 = vpack.c.bf16 %v2574_v18, %v2572_v43 }
 0x400   :  { %3394 = vmatpush3.bf16.msra.mxu0 %v3994_v42  ;;  %3427 = vmatpush3.bf16.msra.mxu1 %v3994_v42 }
 0x401   :  { %2814 = vmatprep.mubr.bf16.mxu1 %v2590_v56  ;;  %3395 = vmatprep.subr.bf16.mxu0 %v3995_v23 }
 0x402   :  { %2815 = vmatmul.mubr.bf16.gmra.mrb[92].mxu1 %v2589_v21  ;;  %3420 = vmatprep.subr.bf16.mxu1 %v3995_v23 }
 0x404   :  { %3396 = vmatpush3.bf16.msra.mxu0 %v3995_v23  ;;  %3428 = vmatpush3.bf16.msra.mxu1 %v3995_v23 }
 0x49d   :  { %v3317_v62 = vpop.f32.mrb[64].mxu1 }
 0x49e   :  { %v3318_v33 = vpop.f32.mrb[65].mxu1 }
 0x49f   :  { %v3319_v34 = vadd.f32 %v3318_v33, %v3317_v62  ;;  %v3320_v35 = vpop.f32.mrb[66].mxu1 }
 0x4a0   :  { %v3321_v37 = vpop.f32.mrb[67].mxu1 }
 0x4a1   :  { %v2761_v38 = vadd.f32 %v3319_v34, %v4518_v1  ;;  %v3322_v36 = vadd.f32 %v3321_v37, %v3320_v35 }
 0x4a3   :  { %v2764_v39 = vadd.f32 %v3322_v36, %v4518_v1  ;;  %v2823_v44 = vmax.f32 %v2761_v38, 0.0 }
 0x4a5   :  { %v2824_v45 = vmax.f32 %v2764_v39, 0.0  ;;  %v3323_v46 = vpop.f32.mrb[68].mxu1 }
 0x4a6   :  { %v3324_v47 = vpop.f32.mrb[69].mxu1 }
 0x4a7   :  { %v3325_v48 = vadd.f32 %v3324_v47, %v3323_v46  ;;  %v3326_v49 = vpop.f32.mrb[70].mxu1  ;;  %v2839_v50 = vpack.c.bf16 %v2824_v45, %v2823_v44 }
 0x4a8   :  { %v3327_v51 = vpop.f32.mrb[71].mxu1 }
 0x4a9   :  { %v2769_v52 = vadd.f32 %v3325_v48, %v4518_v1  ;;  %v3328_v53 = vadd.f32 %v3327_v51, %v3326_v49  ;;  %3397 = vmatprep.mubr.bf16.mxu0 %v2839_v50 }
 0x4ab   :  { %v2772_v54 = vadd.f32 %v3328_v53, %v4518_v1  ;;  %v2825_v3 = vmax.f32 %v2769_v52, 0.0 }
 0x4ad   :  { %v2826_v55 = vmax.f32 %v2772_v54, 0.0  ;;  %v3329_v57 = vpop.f32.mrb[72].mxu1 }
 0x4ae   :  { %v3330_v6 = vpop.f32.mrb[73].mxu1 }
 0x4af   :  { %v2840_v58 = vpack.c.bf16 %v2826_v55, %v2825_v3  ;;  %v3331_v60 = vadd.f32 %v3330_v6, %v3329_v57  ;;  %v3332_v61 = vpop.f32.mrb[74].mxu1 }
 0x4b0   :  { %v3333_v63 = vpop.f32.mrb[75].mxu1 }
 0x4b1   :  { %v2777_v0 = vadd.f32 %v3331_v60, %v4518_v1  ;;  %v3334_v2 = vadd.f32 %v3333_v63, %v3332_v61  ;;  %3398 = vmatmul.mubr.bf16.vlgmr.msra.gmra.mrb[64].mxu0 %v2840_v58  ;;  %v3292_v61 = vld [vmem:[%s4564_s10] ss:$0 sm:$0xff]  ;;  %s4174_s10 = smov [#allocation13]  }
 0x4b2   :  { %s3036_s23 = sshll.u32 %s4174_s10, 4  ;;  %s3037_s23 = int_to_ptr.vmem [resolvable:$true] %s3036_s23 }
 0x4b3   :  { %v2780_v4 = vadd.f32 %v3334_v2, %v4518_v1  ;;  %v2827_v5 = vmax.f32 %v2777_v0, 0.0  ;;  %s4128_s3 = scalar_lea.vmem %s3037_s23, 2048  ;;  %p4133_p7 = scmp.lt.s32.totalorder %s3037_s23, %s3037_s23 }
 0x4b4   :  { %p4129_p6 = scmp.ne.s32.totalorder %s3037_s23, %s4128_s3  ;;  %p4134_p8 = scmp.lt.s32.totalorder %s4128_s3, %s4128_s3 }
 0x4b5   :  { %v2828_v7 = vmax.f32 %v2780_v4, 0.0  ;;  %v3335_v12 = vpop.f32.mrb[76].mxu1 }
 0x4b6   :  { %v3336_v13 = vpop.f32.mrb[77].mxu1  ;;  %p4135_p9 = por %p4134_p8, %p4133_p7 }
 0x4b7   :  { %v3337_v14 = vadd.f32 %v3336_v13, %v3335_v12  ;;  %v3338_v15 = vpop.f32.mrb[78].mxu1  ;;  %v2841_v16 = vpack.c.bf16 %v2828_v7, %v2827_v5 }
 0x4b8   :  { %v3339_v17 = vpop.f32.mrb[79].mxu1  ;;  %p4136_p10 = pnand %p4135_p9, %p4129_p6 }
 0x4b9   :  { %v2785_v20 = vadd.f32 %v3337_v14, %v4518_v1  ;;  %v3340_v22 = vadd.f32 %v3339_v17, %v3338_v15  ;;  %3401 = vmatprep.mubr.bf16.mxu0 %v2841_v16 }
 0x4bb   :  { %v2788_v24 = vadd.f32 %v3340_v22, %v4518_v1  ;;  %v2829_v25 = vmax.f32 %v2785_v20, 0.0 }
 0x4bd   :  { %v2830_v26 = vmax.f32 %v2788_v24, 0.0  ;;  %v3341_v8 = vpop.f32.mrb[80].mxu1 }
 0x4be   :  { %v3342_v27 = vpop.f32.mrb[81].mxu1 }
 0x4bf   :  { %v3343_v9 = vadd.f32 %v3342_v27, %v3341_v8  ;;  %v3344_v28 = vpop.f32.mrb[82].mxu1  ;;  %v2842_v29 = vpack.c.bf16 %v2830_v26, %v2829_v25 }
 0x4c0   :  { %v3345_v30 = vpop.f32.mrb[83].mxu1 }
 0x4c1   :  { %v2793_v31 = vadd.f32 %v3343_v9, %v4518_v1  ;;  %v3346_v10 = vadd.f32 %v3345_v30, %v3344_v28  ;;  %3402 = vmatmul.mubr.bf16.gmra.mrb[68].mxu0 %v2842_v29 }
 0x4c3   :  { %v2796_v11 = vadd.f32 %v3346_v10, %v4518_v1  ;;  %v2831_v32 = vmax.f32 %v2793_v31, 0.0 }
 0x4c5   :  { %v2832_v40 = vmax.f32 %v2796_v11, 0.0  ;;  %v3347_v43 = vpop.f32.mrb[84].mxu1 }
 0x4c6   :  { %v3348_v18 = vpop.f32.mrb[85].mxu1 }
 0x4c7   :  { %v3349_v21 = vadd.f32 %v3348_v18, %v3347_v43  ;;  %v3350_v56 = vpop.f32.mrb[86].mxu1  ;;  %v2843_v59 = vpack.c.bf16 %v2832_v40, %v2831_v32 }
 0x4c8   :  { %v3351_v19 = vpop.f32.mrb[87].mxu1 }
 0x4c9   :  { %v2801_v41 = vadd.f32 %v3349_v21, %v4518_v1  ;;  %v3352_v42 = vadd.f32 %v3351_v19, %v3350_v56  ;;  %3405 = vmatprep.mubr.bf16.mxu1 %v2843_v59 }
 0x4cb   :  { %v2804_v23 = vadd.f32 %v3352_v42, %v4518_v1  ;;  %v2833_v62 = vmax.f32 %v2801_v41, 0.0 }
 0x4cd   :  { %v2834_v33 = vmax.f32 %v2804_v23, 0.0  ;;  %v3353_v34 = vpop.f32.mrb[88].mxu1 }
 0x4ce   :  { %v3354_v35 = vpop.f32.mrb[89].mxu1 }
 0x4cf   :  { %v2844_v37 = vpack.c.bf16 %v2834_v33, %v2833_v62  ;;  %v3355_v38 = vadd.f32 %v3354_v35, %v3353_v34  ;;  %v3356_v36 = vpop.f32.mrb[90].mxu1 }
 0x4d0   :  { %v3357_v39 = vpop.f32.mrb[91].mxu1 }
 0x4d1   :  { %v2809_v44 = vadd.f32 %v3355_v38, %v4518_v1  ;;  %v3358_v45 = vadd.f32 %v3357_v39, %v3356_v36  ;;  %3406 = vmatmul.mubr.bf16.vlgmr.msra.gmra.mrb[96].mxu1 %v2844_v37 }
 0x4d3   :  { %v2812_v46 = vadd.f32 %v3358_v45, %v4518_v1  ;;  %v2835_v47 = vmax.f32 %v2809_v44, 0.0 }
 0x4d5   :  { %v2836_v48 = vmax.f32 %v2812_v46, 0.0  ;;  %v3359_v49 = vpop.f32.mrb[92].mxu1 }
 0x4d6   :  { %v3360_v50 = vpop.f32.mrb[93].mxu1 }
 0x4d7   :  { %v3361_v51 = vadd.f32 %v3360_v50, %v3359_v49  ;;  %v3362_v52 = vpop.f32.mrb[94].mxu1  ;;  %v2845_v53 = vpack.c.bf16 %v2836_v48, %v2835_v47 }
 0x4d8   :  { %v3363_v54 = vpop.f32.mrb[95].mxu1 }
 0x4d9   :  { %v2817_v3 = vadd.f32 %v3361_v51, %v4518_v1  ;;  %v3364_v55 = vadd.f32 %v3363_v54, %v3362_v52  ;;  %3409 = vmatprep.mubr.bf16.mxu1 %v2845_v53 }
 0x4db   :  { %v2820_v57 = vadd.f32 %v3364_v55, %v4518_v1  ;;  %v2837_v6 = vmax.f32 %v2817_v3, 0.0 }
 0x4dd   :  { %v2838_v58 = vmax.f32 %v2820_v57, 0.0 }
 0x4df   :  { %v2846_v60 = vpack.c.bf16 %v2838_v58, %v2837_v6 }
 0x4e1   :  { %3410 = vmatmul.mubr.bf16.gmra.mrb[100].mxu1 %v2846_v60 }
 0x584   :  { %v3399_v63 = vpop.f32.mrb[64].mxu0 }
 0x585   :  { %v2961_v0 = vadd.f32 %v3399_v63, %v3292_v61  ;;  %v2952_v2 = vpop.f32.mrb[65].mxu0 }
 0x586   :  { %v2953_v4 = vadd.f32 %v3292_v61, %v2952_v2  ;;  %v3400_v5 = vpop.f32.mrb[66].mxu0 }
 0x587   :  { %3017 = vst [vmem:[#allocation13 + $0x10] sm:$0xff] %v2961_v0  ;;  %v2964_v7 = vadd.f32 %v3400_v5, %v3292_v61  ;;  %v2955_v12 = vpop.f32.mrb[67].mxu0 }
 0x588   :  { %3015 = vst [vmem:[#allocation13] sm:$0xff] %v2953_v4  ;;  %v2956_v13 = vadd.f32 %v3292_v61, %v2955_v12 }
 0x589   :  { %3018 = vst [vmem:[#allocation13 + $0x18] sm:$0xff] %v2964_v7 }
 0x58a   :  { %3016 = vst [vmem:[#allocation13 + $0x8] sm:$0xff] %v2956_v13 }
 0x594   :  { %v3403_v1 = vpop.f32.mrb[68].mxu0 }
 0x595   :  { %v2977_v14 = vadd.f32 %v3403_v1, %v3292_v61  ;;  %v2968_v15 = vpop.f32.mrb[69].mxu0 }
 0x596   :  { %v2969_v16 = vadd.f32 %v3292_v61, %v2968_v15  ;;  %v3404_v17 = vpop.f32.mrb[70].mxu0 }
 0x597   :  { %3021 = vst [vmem:[#allocation13 + $0x30] sm:$0xff] %v2977_v14  ;;  %v2980_v20 = vadd.f32 %v3404_v17, %v3292_v61  ;;  %v2971_v22 = vpop.f32.mrb[71].mxu0 }
 0x598   :  { %3019 = vst [vmem:[#allocation13 + $0x20] sm:$0xff] %v2969_v16  ;;  %v2972_v24 = vadd.f32 %v3292_v61, %v2971_v22 }
 0x599   :  { %3022 = vst [vmem:[#allocation13 + $0x38] sm:$0xff] %v2980_v20 }
 0x59a   :  { %3020 = vst [vmem:[#allocation13 + $0x28] sm:$0xff] %v2972_v24 }
 0x5a4   :  { %v3407_v25 = vpop.f32.mrb[96].mxu1 }
 0x5a5   :  { %v2993_v26 = vadd.f32 %v3407_v25, %v3292_v61  ;;  %v2984_v8 = vpop.f32.mrb[97].mxu1 }
 0x5a6   :  { %v2985_v27 = vadd.f32 %v3292_v61, %v2984_v8  ;;  %v3408_v9 = vpop.f32.mrb[98].mxu1 }
 0x5a7   :  { %3025 = vst [vmem:[#allocation13 + $0x50] sm:$0xff] %v2993_v26  ;;  %v2996_v28 = vadd.f32 %v3408_v9, %v3292_v61  ;;  %v2987_v29 = vpop.f32.mrb[99].mxu1 }
 0x5a8   :  { %3023 = vst [vmem:[#allocation13 + $0x40] sm:$0xff] %v2985_v27  ;;  %v2988_v30 = vadd.f32 %v3292_v61, %v2987_v29 }
 0x5a9   :  { %3026 = vst [vmem:[#allocation13 + $0x58] sm:$0xff] %v2996_v28 }
 0x5aa   :  { %3024 = vst [vmem:[#allocation13 + $0x48] sm:$0xff] %v2988_v30 }
 0x5b4   :  { %v3411_v31 = vpop.f32.mrb[100].mxu1 }
 0x5b5   :  { %v3009_v10 = vadd.f32 %v3411_v31, %v3292_v61  ;;  %v3000_v11 = vpop.f32.mrb[101].mxu1 }
 0x5b6   :  { %v3001_v32 = vadd.f32 %v3292_v61, %v3000_v11  ;;  %v3412_v40 = vpop.f32.mrb[102].mxu1 }
 0x5b7   :  { %3029 = vst [vmem:[#allocation13 + $0x70] sm:$0xff] %v3009_v10  ;;  %v3012_v43 = vadd.f32 %v3412_v40, %v3292_v61  ;;  %v3003_v18 = vpop.f32.mrb[103].mxu1 }
 0x5b8   :  { %3027 = vst [vmem:[#allocation13 + $0x60] sm:$0xff] %v3001_v32  ;;  %v3004_v21 = vadd.f32 %v3292_v61, %v3003_v18 }
 0x5b9   :  { %3030 = vst [vmem:[#allocation13 + $0x78] sm:$0xff] %v3012_v43 }
 0x5ba   :  { %3028 = vst [vmem:[#allocation13 + $0x68] sm:$0xff] %v3004_v21 }
 0x5bb   :  { %4139 = shalt.err (!%p4136_p10)
}
 0x5bc   :  { %s4140_s26 = scalar_lea.hbm %s4565_s11, 2048 }
 0x5bd   :  { %p4141_p11 = scmp.ne.s32.totalorder %s4565_s11, %s4140_s26  ;;  %p4144_p12 = scmp.lt.u32.totalorder %s4140_s26, %s4565_s11 }
 0x5bf   :  { %p4146_p13 = pnand %p4144_p12, %p4141_p11 }
 0x5c1   :  { %4149 = shalt.err (!%p4146_p13)
}
 0x5c2   :  { %3042 = dma.vmem_to_hbm [thread:$0]  %s3037_s23, 2048, %s4565_s11, [#allocation4], %s4165_s18, %s4165_s18, %s4166_s24  }
 0x5c3   :  { %4158 = dma.done.wait [#allocation4], 2048  }
 0x5c4   :  { %4159 = vsyncadd [#allocation4], 4294965248 }
 0x5c5   :  { %3046 = vsyncpa [#allocation3], 1 }
 0x5c6   :  { %3047 = vsyncpa [#allocation6], 1 }
 0x5c7   :  { %3048 = vsyncpa [#allocation9], 1 }
 0x5c8   :  { %3049 = vsyncpa [#allocation12], 1 }
 0x5c9   :  { %3050 = vsyncpa [#allocation4], 1 }

</bundles_post_ra>
